<compile_context>
chip_gen: v6e
topology: v6e:2x2x1
jax: 0.10.0
libtpu: 0.0.40
codegen_flags: <defaults>
</compile_context>

<pallas_src>
import math
import functools

import jax
import jax.numpy as jnp
from jax.experimental import pallas as pl
from jax.experimental.pallas import tpu as pltpu


# ----------------------------- in-kernel helpers -----------------------------

def _layer_norm(x, w, b, eps=1e-5):
    mu = jnp.mean(x, axis=-1, keepdims=True)
    var = jnp.mean((x - mu) ** 2, axis=-1, keepdims=True)
    return (x - mu) * jax.lax.rsqrt(var + eps) * w + b


def _gelu_tanh(x):
    c = math.sqrt(2.0 / math.pi)
    return 0.5 * x * (1.0 + jnp.tanh(c * (x + 0.044715 * x * x * x)))


# ------------------------------ fused kernel body -----------------------------

def encoder_kernel(x_ref, convw_ref, convb_ref, gnw_ref, gnb_ref, pos_ref,
                   g2_ref,
                   ln1w_ref, ln1b_ref, wqkv_ref, bqkv_ref, wo_ref, bo_ref,
                   ln2w_ref, ln2b_ref, fcw_ref, fcb_ref, pjw_ref, pjb_ref,
                   lnfw_ref, lnfb_ref,
                   o_ref,
                   y_ref,
                   *, nhead, ngroup, num_layers):
    S, C = x_ref.shape                       # one sample: (seq, kp_dim)
    E = o_ref.shape[-1]
    hd = E // nhead
    gsz = E // ngroup

    # --- keypoint embedding: conv1d(kernel_size=1) == per-keypoint linear -----
    # K = C is tiny (2) -> VPU broadcast FMAs, not a pathological MXU contraction
    x = x_ref[...]                                           # (S, C) f32
    emb = jnp.zeros((S, E), jnp.float32) + convb_ref[...]
    for c in range(C):
        emb = emb + x[:, c:c + 1] * convw_ref[c:c + 1, :]

    # --- GroupNorm: per-sample, per channel-group stats over (S, group) -------
    # Two-pass (mean, then mean of squared deviation); group broadcast via the
    # small (E, E) same-group indicator matrix g2 (no (BS, BS) matrix).
    g2 = g2_ref[...]
    inv_denom = 1.0 / float(S * gsz)
    mu = jnp.sum(jnp.dot(emb, g2, preferred_element_type=jnp.float32),
                 axis=0, keepdims=True) * inv_denom          # (1, E)
    d = emb - mu
    var = jnp.sum(jnp.dot(d * d, g2, preferred_element_type=jnp.float32),
                  axis=0, keepdims=True) * inv_denom         # (1, E)
    gn = d * jax.lax.rsqrt(var + 1e-5) * gnw_ref[...] + gnb_ref[...]

    # learned positional embedding (pe[:S] passed directly as (S, E))
    h0 = gn + pos_ref[...]

    inv_sqrt_hd = 1.0 / math.sqrt(hd)

    # --------------------------- SA blocks (pre-norm) -------------------------
    def layer_body(l, h):
        # pre-norm MHSA
        xn = _layer_norm(h, ln1w_ref[l], ln1b_ref[l])
        qkv = jnp.dot(xn.astype(jnp.bfloat16), wqkv_ref[l],
                      preferred_element_type=jnp.float32) + bqkv_ref[l]
        q = qkv[:, 0:E] * inv_sqrt_hd        # fold 1/sqrt(hd) into q once
        k = qkv[:, E:2 * E]
        v = qkv[:, 2 * E:3 * E]

        # per-head attention, results written directly into VMEM scratch slab
        for hh in range(nhead):
            c0 = hh * hd
            qh = q[:, c0:c0 + hd]
            kh = k[:, c0:c0 + hd]
            vh = v[:, c0:c0 + hd]
            att = jax.lax.dot_general(qh, kh, (((1,), (1,)), ((), ())),
                                      preferred_element_type=jnp.float32)
            att = att - jnp.max(att, axis=-1, keepdims=True)
            p = jnp.exp(att)
            p = p * pl.reciprocal(jnp.sum(p, axis=-1, keepdims=True),
                                  approx=True)
            y_ref[:, c0:c0 + hd] = jnp.dot(p, vh,
                                           preferred_element_type=jnp.float32)

        attn = jnp.dot(y_ref[...].astype(jnp.bfloat16), wo_ref[l],
                       preferred_element_type=jnp.float32) + bo_ref[l]
        h = h + attn

        # pre-norm MLP (GELU tanh)
        xn2 = _layer_norm(h, ln2w_ref[l], ln2b_ref[l])
        h1 = jnp.dot(xn2.astype(jnp.bfloat16), fcw_ref[l],
                     preferred_element_type=jnp.float32) + fcb_ref[l]
        h1 = _gelu_tanh(h1)
        h2 = jnp.dot(h1.astype(jnp.bfloat16), pjw_ref[l],
                     preferred_element_type=jnp.float32) + pjb_ref[l]
        return h + h2

    h = jax.lax.fori_loop(0, num_layers, layer_body, h0, unroll=True)

    # --------------------------- final LayerNorm ------------------------------
    o_ref[...] = _layer_norm(h, lnfw_ref[...], lnfb_ref[...])


# ------------------------------ pallas wrapper --------------------------------

def dlo_encoder(x, params, *, nhead, ngroup):
    """x: [B, S, kp_dim] -> [B, S, embed_dim]; one fused pallas_call."""
    B, S, C = x.shape
    E = params["conv_wT"].shape[1]
    L = params["wqkv"].shape[0]
    assert L >= 1
    assert E % nhead == 0, (E, nhead)
    assert E % ngroup == 0, (E, ngroup)

    x2d = x.reshape(B * S, C).astype(jnp.float32)
    pos = params["pe"][:S].astype(jnp.float32)               # (S, E)
    gid = jnp.arange(E) // (E // ngroup)
    g2 = (gid[:, None] == gid[None, :]).astype(jnp.float32)  # (E, E) same-group

    def full_spec(a):                     # grid-invariant, whole array resident
        n = a.ndim
        return pl.BlockSpec(a.shape, lambda b, _n=n: (0,) * _n)

    invariant = (params["conv_wT"], params["conv_b"],
                 params["gn_w"], params["gn_b"], pos, g2,
                 params["ln1_w"], params["ln1_b"],
                 params["wqkv"], params["bqkv"],
                 params["wo"], params["bo"],
                 params["ln2_w"], params["ln2_b"],
                 params["fc_w"], params["fc_b"],
                 params["pj_w"], params["pj_b"],
                 params["lnf_w"], params["lnf_b"])

    in_specs = ([pl.BlockSpec((S, C), lambda b: (b, 0))]      # per-sample rows
                + [full_spec(a) for a in invariant])

    kern = functools.partial(encoder_kernel, nhead=nhead, ngroup=ngroup,
                             num_layers=L)
    out2d = pl.pallas_call(
        kern,
        out_shape=jax.ShapeDtypeStruct((B * S, E), jnp.float32),
        grid=(B,),
        in_specs=in_specs,
        out_specs=pl.BlockSpec((S, E), lambda b: (b, 0)),
        scratch_shapes=[pltpu.VMEM((S, E), jnp.float32)],      # attention slab
        compiler_params=pltpu.CompilerParams(
            dimension_semantics=("parallel",),                 # samples independent
            vmem_limit_bytes=32 * 1024 * 1024),                # safe on v5e/v6e/v7x
    )(x2d, *invariant)
    return out2d.reshape(B, S, E)


# ------------------------------ parameter init --------------------------------

def init_params(key, *, kp_dim, embed_dim, max_kp, num_layers):
    E, L = embed_dim, num_layers

    def nrm(k, shape, std=0.02):
        return (std * jax.random.normal(k, shape)).astype(jnp.float32)

    ks = jax.random.split(key, 10)
    return {
        # keypoint embedding (conv1d k=1 stored pre-transposed [in, out]) + GroupNorm
        "conv_wT": nrm(ks[0], (kp_dim, E), std=0.2),
        "conv_b": nrm(ks[1], (1, E)),
        "gn_w": jnp.ones((1, E), jnp.float32),
        "gn_b": jnp.zeros((1, E), jnp.float32),
        # learned positional embedding table
        "pe": nrm(ks[2], (max_kp, E)),
        # stacked per-layer SA-block weights ([L, ...]); matmul weights in bf16
        "ln1_w": jnp.ones((L, 1, E), jnp.float32),
        "ln1_b": jnp.zeros((L, 1, E), jnp.float32),
        "wqkv": nrm(ks[3], (L, E, 3 * E)).astype(jnp.bfloat16),
        "bqkv": nrm(ks[4], (L, 1, 3 * E)),
        "wo": nrm(ks[5], (L, E, E)).astype(jnp.bfloat16),
        "bo": nrm(ks[6], (L, 1, E)),
        "ln2_w": jnp.ones((L, 1, E), jnp.float32),
        "ln2_b": jnp.zeros((L, 1, E), jnp.float32),
        "fc_w": nrm(ks[7], (L, E, 2 * E)).astype(jnp.bfloat16),
        "fc_b": nrm(ks[8], (L, 1, 2 * E)),
        "pj_w": nrm(ks[9], (L, 2 * E, E)).astype(jnp.bfloat16),
        "pj_b": jnp.zeros((L, 1, E), jnp.float32),
        # final LayerNorm
        "lnf_w": jnp.ones((1, E), jnp.float32),
        "lnf_b": jnp.zeros((1, E), jnp.float32),
    }


# ------------------------------ pure-JAX reference -----------------------------

def dlo_encoder_ref(x, params, *, nhead, ngroup):
    B, S, _ = x.shape
    E = params["conv_wT"].shape[1]
    L = params["wqkv"].shape[0]
    hd = E // nhead
    gs = E // ngroup

    def ln(t, w, b):
        mu = jnp.mean(t, -1, keepdims=True)
        var = jnp.mean((t - mu) ** 2, -1, keepdims=True)
        return (t - mu) / jnp.sqrt(var + 1e-5) * w + b

    emb = jnp.einsum("bsc,ce->bse", x, params["conv_wT"]) + params["conv_b"]
    e4 = emb.reshape(B, S, ngroup, gs)
    mu = jnp.mean(e4, axis=(1, 3), keepdims=True)
    var = jnp.mean((e4 - mu) ** 2, axis=(1, 3), keepdims=True)
    gn = ((e4 - mu) / jnp.sqrt(var + 1e-5)).reshape(B, S, E)
    h = gn * params["gn_w"] + params["gn_b"] + params["pe"][:S][None]

    for l in range(L):
        xn = ln(h, params["ln1_w"][l], params["ln1_b"][l])
        qkv = xn @ params["wqkv"][l].astype(jnp.float32) + params["bqkv"][l]
        q, k, v = jnp.split(qkv, 3, axis=-1)
        sp = lambda t: t.reshape(B, S, nhead, hd).transpose(0, 2, 1, 3)
        qh, kh, vh = sp(q), sp(k), sp(v)
        att = jnp.einsum("bhqd,bhkd->bhqk", qh, kh) / math.sqrt(hd)
        att = jax.nn.softmax(att, axis=-1)
        y = jnp.einsum("bhqk,bhkd->bhqd", att, vh)
        y = y.transpose(0, 2, 1, 3).reshape(B, S, E)
        h = h + y @ params["wo"][l].astype(jnp.float32) + params["bo"][l]
        xn2 = ln(h, params["ln2_w"][l], params["ln2_b"][l])
        h1 = xn2 @ params["fc_w"][l].astype(jnp.float32) + params["fc_b"][l]
        h1 = 0.5 * h1 * (1.0 + jnp.tanh(math.sqrt(2.0 / math.pi)
                                        * (h1 + 0.044715 * h1 ** 3)))
        h = h + h1 @ params["pj_w"][l].astype(jnp.float32) + params["pj_b"][l]
    return ln(h, params["lnf_w"], params["lnf_b"])


# ----------------------------------- main -------------------------------------

if __name__ == "__main__":
    # small GDM_CFG-like config
    B, S = 2, 8
    KP_DIM = 2
    EMBED_DIM = 32
    NHEAD = 4
    NUM_LAYERS = 2
    NGROUP = 4
    MAX_KP = 16

    key = jax.random.PRNGKey(0)
    k_x, k_p = jax.random.split(key)
    x = jax.random.normal(k_x, (B, S, KP_DIM), jnp.float32)
    params = init_params(k_p, kp_dim=KP_DIM, embed_dim=EMBED_DIM,
                         max_kp=MAX_KP, num_layers=NUM_LAYERS)

    out = dlo_encoder(x, params, nhead=NHEAD, ngroup=NGROUP)
    out = jax.block_until_ready(out)

    assert out.shape == (B, S, EMBED_DIM), out.shape
    assert bool(jnp.all(jnp.isfinite(out)))

    # loose check vs pure-JAX f32 reference (kernel uses bf16 MXU inputs +
    # approx reciprocal, so allow a generous tolerance)
    ref = dlo_encoder_ref(x, params, nhead=NHEAD, ngroup=NGROUP)
    max_err = float(jnp.max(jnp.abs(out - ref)))
    assert max_err < 1e-1, max_err

    print("KERNEL_OK")
</pallas_src>

<mosaic_0001>
module attributes {stable_mosaic.version = 11 : i64} {
  func.func @encoder_kernel(%arg0: i32, %arg1: memref<8x2xf32, #tpu.memory_space<vmem>>, %arg2: memref<2x32xf32, #tpu.memory_space<vmem>>, %arg3: memref<1x32xf32, #tpu.memory_space<vmem>>, %arg4: memref<1x32xf32, #tpu.memory_space<vmem>>, %arg5: memref<1x32xf32, #tpu.memory_space<vmem>>, %arg6: memref<8x32xf32, #tpu.memory_space<vmem>>, %arg7: memref<32x32xf32, #tpu.memory_space<vmem>>, %arg8: memref<2x1x32xf32, #tpu.memory_space<vmem>>, %arg9: memref<2x1x32xf32, #tpu.memory_space<vmem>>, %arg10: memref<2x32x96xbf16, #tpu.memory_space<vmem>>, %arg11: memref<2x1x96xf32, #tpu.memory_space<vmem>>, %arg12: memref<2x32x32xbf16, #tpu.memory_space<vmem>>, %arg13: memref<2x1x32xf32, #tpu.memory_space<vmem>>, %arg14: memref<2x1x32xf32, #tpu.memory_space<vmem>>, %arg15: memref<2x1x32xf32, #tpu.memory_space<vmem>>, %arg16: memref<2x32x64xbf16, #tpu.memory_space<vmem>>, %arg17: memref<2x1x64xf32, #tpu.memory_space<vmem>>, %arg18: memref<2x64x32xbf16, #tpu.memory_space<vmem>>, %arg19: memref<2x1x32xf32, #tpu.memory_space<vmem>>, %arg20: memref<1x32xf32, #tpu.memory_space<vmem>>, %arg21: memref<1x32xf32, #tpu.memory_space<vmem>>, %arg22: memref<8x32xf32, #tpu.memory_space<vmem>>, %arg23: memref<8x32xf32, #tpu.memory_space<vmem>>) attributes {dimension_semantics = [#tpu.dimension_semantics<parallel>], iteration_bounds = array<i64: 2>, scalar_prefetch = 0 : i64, scratch_operands = 1 : i64, tpu.core_type = #tpu.core_type<tc>, window_params = [{transform_indices = @transform_0, window_bounds = array<i64: 8, 2>}, {pipeline_mode = #tpu.pipeline_mode<synchronous>, transform_indices = @transform_1, window_bounds = array<i64: 2, 32>}, {pipeline_mode = #tpu.pipeline_mode<synchronous>, transform_indices = @transform_2, window_bounds = array<i64: 1, 32>}, {pipeline_mode = #tpu.pipeline_mode<synchronous>, transform_indices = @transform_3, window_bounds = array<i64: 1, 32>}, {pipeline_mode = #tpu.pipeline_mode<synchronous>, transform_indices = @transform_4, window_bounds = array<i64: 1, 32>}, {pipeline_mode = #tpu.pipeline_mode<synchronous>, transform_indices = @transform_5, window_bounds = array<i64: 8, 32>}, {pipeline_mode = #tpu.pipeline_mode<synchronous>, transform_indices = @transform_6, window_bounds = array<i64: 32, 32>}, {pipeline_mode = #tpu.pipeline_mode<synchronous>, transform_indices = @transform_7, window_bounds = array<i64: 2, 1, 32>}, {pipeline_mode = #tpu.pipeline_mode<synchronous>, transform_indices = @transform_8, window_bounds = array<i64: 2, 1, 32>}, {pipeline_mode = #tpu.pipeline_mode<synchronous>, transform_indices = @transform_9, window_bounds = array<i64: 2, 32, 96>}, {pipeline_mode = #tpu.pipeline_mode<synchronous>, transform_indices = @transform_10, window_bounds = array<i64: 2, 1, 96>}, {pipeline_mode = #tpu.pipeline_mode<synchronous>, transform_indices = @transform_11, window_bounds = array<i64: 2, 32, 32>}, {pipeline_mode = #tpu.pipeline_mode<synchronous>, transform_indices = @transform_12, window_bounds = array<i64: 2, 1, 32>}, {pipeline_mode = #tpu.pipeline_mode<synchronous>, transform_indices = @transform_13, window_bounds = array<i64: 2, 1, 32>}, {pipeline_mode = #tpu.pipeline_mode<synchronous>, transform_indices = @transform_14, window_bounds = array<i64: 2, 1, 32>}, {pipeline_mode = #tpu.pipeline_mode<synchronous>, transform_indices = @transform_15, window_bounds = array<i64: 2, 32, 64>}, {pipeline_mode = #tpu.pipeline_mode<synchronous>, transform_indices = @transform_16, window_bounds = array<i64: 2, 1, 64>}, {pipeline_mode = #tpu.pipeline_mode<synchronous>, transform_indices = @transform_17, window_bounds = array<i64: 2, 64, 32>}, {pipeline_mode = #tpu.pipeline_mode<synchronous>, transform_indices = @transform_18, window_bounds = array<i64: 2, 1, 32>}, {pipeline_mode = #tpu.pipeline_mode<synchronous>, transform_indices = @transform_19, window_bounds = array<i64: 1, 32>}, {pipeline_mode = #tpu.pipeline_mode<synchronous>, transform_indices = @transform_20, window_bounds = array<i64: 1, 32>}, {transform_indices = @transform_21, window_bounds = array<i64: 8, 32>}]} {
    %c0 = arith.constant 0 : index
    %c0_0 = arith.constant 0 : index
    %0 = vector.load %arg1[%c0, %c0_0] : memref<8x2xf32, #tpu.memory_space<vmem>>, vector<8x2xf32>
    %cst = arith.constant 0.000000e+00 : f32
    %1 = vector.broadcast %cst : f32 to vector<8x32xf32>
    %c0_1 = arith.constant 0 : index
    %c0_2 = arith.constant 0 : index
    %2 = vector.load %arg3[%c0_1, %c0_2] : memref<1x32xf32, #tpu.memory_space<vmem>>, vector<1x32xf32>
    %3 = vector.broadcast %2 : vector<1x32xf32> to vector<8x32xf32>
    %4 = arith.addf %1, %3 : vector<8x32xf32>
    %5 = vector.extract_strided_slice %0 {offsets = [0, 0], sizes = [8, 1], strides = [1, 1]} : vector<8x2xf32> to vector<8x1xf32>
    %c0_3 = arith.constant 0 : index
    %c0_4 = arith.constant 0 : index
    %6 = vector.load %arg2[%c0_3, %c0_4] : memref<2x32xf32, #tpu.memory_space<vmem>>, vector<1x32xf32>
    %7 = vector.broadcast %5 : vector<8x1xf32> to vector<8x32xf32>
    %8 = vector.broadcast %6 : vector<1x32xf32> to vector<8x32xf32>
    %9 = arith.mulf %7, %8 : vector<8x32xf32>
    %10 = arith.addf %4, %9 : vector<8x32xf32>
    %11 = vector.extract_strided_slice %0 {offsets = [0, 1], sizes = [8, 1], strides = [1, 1]} : vector<8x2xf32> to vector<8x1xf32>
    %c1 = arith.constant 1 : index
    %c0_5 = arith.constant 0 : index
    %12 = vector.load %arg2[%c1, %c0_5] : memref<2x32xf32, #tpu.memory_space<vmem>>, vector<1x32xf32>
    %13 = vector.broadcast %11 : vector<8x1xf32> to vector<8x32xf32>
    %14 = vector.broadcast %12 : vector<1x32xf32> to vector<8x32xf32>
    %15 = arith.mulf %13, %14 : vector<8x32xf32>
    %16 = arith.addf %10, %15 : vector<8x32xf32>
    %c0_6 = arith.constant 0 : index
    %c0_7 = arith.constant 0 : index
    %17 = vector.load %arg7[%c0_6, %c0_7] : memref<32x32xf32, #tpu.memory_space<vmem>>, vector<32x32xf32>
    %cst_8 = arith.constant dense<0.000000e+00> : vector<8x32xf32>
    %18 = tpu.matmul %16, %17, %cst_8 {dimension_numbers = #tpu.dot_dimension_numbers<[1], [0], [0], [1], [0, 0, 1, 1], [], []>} : vector<8x32xf32>, vector<32x32xf32>, vector<8x32xf32> -> vector<8x32xf32>
    %cst_9 = arith.constant dense<0.000000e+00> : vector<32xf32>
    %19 = vector.multi_reduction <add>, %18, %cst_9 [0] : vector<8x32xf32> to vector<32xf32>
    %20 = vector.shape_cast %19 : vector<32xf32> to vector<1x32xf32>
    %cst_10 = arith.constant 1.562500e-02 : f32
    %21 = vector.broadcast %cst_10 : f32 to vector<1x32xf32>
    %22 = arith.mulf %20, %21 : vector<1x32xf32>
    %23 = vector.broadcast %22 : vector<1x32xf32> to vector<8x32xf32>
    %24 = arith.subf %16, %23 : vector<8x32xf32>
    %25 = arith.mulf %24, %24 : vector<8x32xf32>
    %cst_11 = arith.constant dense<0.000000e+00> : vector<8x32xf32>
    %26 = tpu.matmul %25, %17, %cst_11 {dimension_numbers = #tpu.dot_dimension_numbers<[1], [0], [0], [1], [0, 0, 1, 1], [], []>} : vector<8x32xf32>, vector<32x32xf32>, vector<8x32xf32> -> vector<8x32xf32>
    %cst_12 = arith.constant dense<0.000000e+00> : vector<32xf32>
    %27 = vector.multi_reduction <add>, %26, %cst_12 [0] : vector<8x32xf32> to vector<32xf32>
    %28 = vector.shape_cast %27 : vector<32xf32> to vector<1x32xf32>
    %cst_13 = arith.constant 1.562500e-02 : f32
    %29 = vector.broadcast %cst_13 : f32 to vector<1x32xf32>
    %30 = arith.mulf %28, %29 : vector<1x32xf32>
    %cst_14 = arith.constant 9.99999974E-6 : f32
    %31 = vector.broadcast %cst_14 : f32 to vector<1x32xf32>
    %32 = arith.addf %30, %31 : vector<1x32xf32>
    %33 = math.rsqrt %32 : vector<1x32xf32>
    %34 = vector.broadcast %33 : vector<1x32xf32> to vector<8x32xf32>
    %35 = arith.mulf %24, %34 : vector<8x32xf32>
    %c0_15 = arith.constant 0 : index
    %c0_16 = arith.constant 0 : index
    %36 = vector.load %arg4[%c0_15, %c0_16] : memref<1x32xf32, #tpu.memory_space<vmem>>, vector<1x32xf32>
    %37 = vector.broadcast %36 : vector<1x32xf32> to vector<8x32xf32>
    %38 = arith.mulf %35, %37 : vector<8x32xf32>
    %c0_17 = arith.constant 0 : index
    %c0_18 = arith.constant 0 : index
    %39 = vector.load %arg5[%c0_17, %c0_18] : memref<1x32xf32, #tpu.memory_space<vmem>>, vector<1x32xf32>
    %40 = vector.broadcast %39 : vector<1x32xf32> to vector<8x32xf32>
    %41 = arith.addf %38, %40 : vector<8x32xf32>
    %c0_19 = arith.constant 0 : index
    %c0_20 = arith.constant 0 : index
    %42 = vector.load %arg6[%c0_19, %c0_20] : memref<8x32xf32, #tpu.memory_space<vmem>>, vector<8x32xf32>
    %43 = arith.addf %41, %42 : vector<8x32xf32>
    %c0_i32 = arith.constant 0 : i32
    %44 = arith.index_cast %c0_i32 : i32 to index
    %c0_21 = arith.constant 0 : index
    %c0_22 = arith.constant 0 : index
    %45 = vector.load %arg8[%44, %c0_21, %c0_22] : memref<2x1x32xf32, #tpu.memory_space<vmem>>, vector<1x1x32xf32>
    %46 = vector.shape_cast %45 : vector<1x1x32xf32> to vector<1x32xf32>
    %47 = arith.index_cast %c0_i32 : i32 to index
    %c0_23 = arith.constant 0 : index
    %c0_24 = arith.constant 0 : index
    %48 = vector.load %arg9[%47, %c0_23, %c0_24] : memref<2x1x32xf32, #tpu.memory_space<vmem>>, vector<1x1x32xf32>
    %49 = vector.shape_cast %48 : vector<1x1x32xf32> to vector<1x32xf32>
    %cst_25 = arith.constant dense<0.000000e+00> : vector<8xf32>
    %50 = vector.multi_reduction <add>, %43, %cst_25 [1] : vector<8x32xf32> to vector<8xf32>
    %51 = vector.shape_cast %50 : vector<8xf32> to vector<8x1xf32>
    %cst_26 = arith.constant 3.200000e+01 : f32
    %52 = vector.broadcast %cst_26 : f32 to vector<8x1xf32>
    %53 = arith.divf %51, %52 : vector<8x1xf32>
    %54 = vector.broadcast %53 : vector<8x1xf32> to vector<8x32xf32>
    %55 = arith.subf %43, %54 : vector<8x32xf32>
    %56 = arith.mulf %55, %55 : vector<8x32xf32>
    %cst_27 = arith.constant dense<0.000000e+00> : vector<8xf32>
    %57 = vector.multi_reduction <add>, %56, %cst_27 [1] : vector<8x32xf32> to vector<8xf32>
    %58 = vector.shape_cast %57 : vector<8xf32> to vector<8x1xf32>
    %cst_28 = arith.constant 3.200000e+01 : f32
    %59 = vector.broadcast %cst_28 : f32 to vector<8x1xf32>
    %60 = arith.divf %58, %59 : vector<8x1xf32>
    %61 = vector.broadcast %53 : vector<8x1xf32> to vector<8x32xf32>
    %62 = arith.subf %43, %61 : vector<8x32xf32>
    %cst_29 = arith.constant 9.99999974E-6 : f32
    %63 = vector.broadcast %cst_29 : f32 to vector<8x1xf32>
    %64 = arith.addf %60, %63 : vector<8x1xf32>
    %65 = math.rsqrt %64 : vector<8x1xf32>
    %66 = vector.broadcast %65 : vector<8x1xf32> to vector<8x32xf32>
    %67 = arith.mulf %62, %66 : vector<8x32xf32>
    %68 = vector.broadcast %46 : vector<1x32xf32> to vector<8x32xf32>
    %69 = arith.mulf %67, %68 : vector<8x32xf32>
    %70 = vector.broadcast %49 : vector<1x32xf32> to vector<8x32xf32>
    %71 = arith.addf %69, %70 : vector<8x32xf32>
    %72 = arith.truncf %71 : vector<8x32xf32> to vector<8x32xbf16>
    %73 = arith.index_cast %c0_i32 : i32 to index
    %c0_30 = arith.constant 0 : index
    %c0_31 = arith.constant 0 : index
    %74 = vector.load %arg10[%73, %c0_30, %c0_31] : memref<2x32x96xbf16, #tpu.memory_space<vmem>>, vector<1x32x96xbf16>
    %75 = vector.shape_cast %74 : vector<1x32x96xbf16> to vector<32x96xbf16>
    %cst_32 = arith.constant dense<0.000000e+00> : vector<8x96xf32>
    %76 = tpu.matmul %72, %75, %cst_32 {dimension_numbers = #tpu.dot_dimension_numbers<[1], [0], [0], [1], [0, 0, 1, 1], [], []>} : vector<8x32xbf16>, vector<32x96xbf16>, vector<8x96xf32> -> vector<8x96xf32>
    %77 = arith.index_cast %c0_i32 : i32 to index
    %c0_33 = arith.constant 0 : index
    %c0_34 = arith.constant 0 : index
    %78 = vector.load %arg11[%77, %c0_33, %c0_34] : memref<2x1x96xf32, #tpu.memory_space<vmem>>, vector<1x1x96xf32>
    %79 = vector.shape_cast %78 : vector<1x1x96xf32> to vector<1x96xf32>
    %80 = vector.broadcast %79 : vector<1x96xf32> to vector<8x96xf32>
    %81 = arith.addf %76, %80 : vector<8x96xf32>
    %82 = vector.extract_strided_slice %81 {offsets = [0, 0], sizes = [8, 32], strides = [1, 1]} : vector<8x96xf32> to vector<8x32xf32>
    %cst_35 = arith.constant 0.353553385 : f32
    %83 = vector.broadcast %cst_35 : f32 to vector<8x32xf32>
    %84 = arith.mulf %82, %83 : vector<8x32xf32>
    %85 = vector.extract_strided_slice %81 {offsets = [0, 32], sizes = [8, 32], strides = [1, 1]} : vector<8x96xf32> to vector<8x32xf32>
    %86 = vector.extract_strided_slice %81 {offsets = [0, 64], sizes = [8, 32], strides = [1, 1]} : vector<8x96xf32> to vector<8x32xf32>
    %87 = vector.extract_strided_slice %84 {offsets = [0, 0], sizes = [8, 8], strides = [1, 1]} : vector<8x32xf32> to vector<8x8xf32>
    %88 = vector.extract_strided_slice %85 {offsets = [0, 0], sizes = [8, 8], strides = [1, 1]} : vector<8x32xf32> to vector<8x8xf32>
    %89 = vector.extract_strided_slice %86 {offsets = [0, 0], sizes = [8, 8], strides = [1, 1]} : vector<8x32xf32> to vector<8x8xf32>
    %cst_36 = arith.constant dense<0.000000e+00> : vector<8x8xf32>
    %90 = tpu.matmul %87, %88, %cst_36 {dimension_numbers = #tpu.dot_dimension_numbers<[1], [1], [0], [0], [0, 0, 1, 0], [], []>} : vector<8x8xf32>, vector<8x8xf32>, vector<8x8xf32> -> vector<8x8xf32>
    %cst_37 = arith.constant dense<0xFF800000> : vector<8xf32>
    %91 = vector.multi_reduction <maximumf>, %90, %cst_37 [1] : vector<8x8xf32> to vector<8xf32>
    %92 = vector.shape_cast %91 : vector<8xf32> to vector<8x1xf32>
    %93 = vector.broadcast %92 : vector<8x1xf32> to vector<8x8xf32>
    %94 = arith.subf %90, %93 : vector<8x8xf32>
    %95 = math.exp %94 : vector<8x8xf32>
    %cst_38 = arith.constant dense<0.000000e+00> : vector<8xf32>
    %96 = vector.multi_reduction <add>, %95, %cst_38 [1] : vector<8x8xf32> to vector<8xf32>
    %97 = vector.shape_cast %96 : vector<8xf32> to vector<8x1xf32>
    %98 = tpu.reciprocal %97 {approx = true} : vector<8x1xf32> -> vector<8x1xf32>
    %99 = vector.broadcast %98 : vector<8x1xf32> to vector<8x8xf32>
    %100 = arith.mulf %95, %99 : vector<8x8xf32>
    %cst_39 = arith.constant dense<0.000000e+00> : vector<8x8xf32>
    %101 = tpu.matmul %100, %89, %cst_39 {dimension_numbers = #tpu.dot_dimension_numbers<[1], [0], [0], [1], [0, 0, 1, 1], [], []>} : vector<8x8xf32>, vector<8x8xf32>, vector<8x8xf32> -> vector<8x8xf32>
    %c0_40 = arith.constant 0 : index
    %c0_41 = arith.constant 0 : index
    %102 = vector.load %arg23[%c0_40, %c0_41] : memref<8x32xf32, #tpu.memory_space<vmem>>, vector<8x8xf32>
    tpu.vector_store %arg23[%c0_40, %c0_41], %101 {strides = array<i32>} : memref<8x32xf32, #tpu.memory_space<vmem>>, vector<8x8xf32>,
    %103 = vector.extract_strided_slice %84 {offsets = [0, 8], sizes = [8, 8], strides = [1, 1]} : vector<8x32xf32> to vector<8x8xf32>
    %104 = vector.extract_strided_slice %85 {offsets = [0, 8], sizes = [8, 8], strides = [1, 1]} : vector<8x32xf32> to vector<8x8xf32>
    %105 = vector.extract_strided_slice %86 {offsets = [0, 8], sizes = [8, 8], strides = [1, 1]} : vector<8x32xf32> to vector<8x8xf32>
    %cst_42 = arith.constant dense<0.000000e+00> : vector<8x8xf32>
    %106 = tpu.matmul %103, %104, %cst_42 {dimension_numbers = #tpu.dot_dimension_numbers<[1], [1], [0], [0], [0, 0, 1, 0], [], []>} : vector<8x8xf32>, vector<8x8xf32>, vector<8x8xf32> -> vector<8x8xf32>
    %cst_43 = arith.constant dense<0xFF800000> : vector<8xf32>
    %107 = vector.multi_reduction <maximumf>, %106, %cst_43 [1] : vector<8x8xf32> to vector<8xf32>
    %108 = vector.shape_cast %107 : vector<8xf32> to vector<8x1xf32>
    %109 = vector.broadcast %108 : vector<8x1xf32> to vector<8x8xf32>
    %110 = arith.subf %106, %109 : vector<8x8xf32>
    %111 = math.exp %110 : vector<8x8xf32>
    %cst_44 = arith.constant dense<0.000000e+00> : vector<8xf32>
    %112 = vector.multi_reduction <add>, %111, %cst_44 [1] : vector<8x8xf32> to vector<8xf32>
    %113 = vector.shape_cast %112 : vector<8xf32> to vector<8x1xf32>
    %114 = tpu.reciprocal %113 {approx = true} : vector<8x1xf32> -> vector<8x1xf32>
    %115 = vector.broadcast %114 : vector<8x1xf32> to vector<8x8xf32>
    %116 = arith.mulf %111, %115 : vector<8x8xf32>
    %cst_45 = arith.constant dense<0.000000e+00> : vector<8x8xf32>
    %117 = tpu.matmul %116, %105, %cst_45 {dimension_numbers = #tpu.dot_dimension_numbers<[1], [0], [0], [1], [0, 0, 1, 1], [], []>} : vector<8x8xf32>, vector<8x8xf32>, vector<8x8xf32> -> vector<8x8xf32>
    %c0_46 = arith.constant 0 : index
    %c8 = arith.constant 8 : index
    %118 = vector.load %arg23[%c0_46, %c8] : memref<8x32xf32, #tpu.memory_space<vmem>>, vector<8x8xf32>
    tpu.vector_store %arg23[%c0_46, %c8], %117 {strides = array<i32>} : memref<8x32xf32, #tpu.memory_space<vmem>>, vector<8x8xf32>,
    %119 = vector.extract_strided_slice %84 {offsets = [0, 16], sizes = [8, 8], strides = [1, 1]} : vector<8x32xf32> to vector<8x8xf32>
    %120 = vector.extract_strided_slice %85 {offsets = [0, 16], sizes = [8, 8], strides = [1, 1]} : vector<8x32xf32> to vector<8x8xf32>
    %121 = vector.extract_strided_slice %86 {offsets = [0, 16], sizes = [8, 8], strides = [1, 1]} : vector<8x32xf32> to vector<8x8xf32>
    %cst_47 = arith.constant dense<0.000000e+00> : vector<8x8xf32>
    %122 = tpu.matmul %119, %120, %cst_47 {dimension_numbers = #tpu.dot_dimension_numbers<[1], [1], [0], [0], [0, 0, 1, 0], [], []>} : vector<8x8xf32>, vector<8x8xf32>, vector<8x8xf32> -> vector<8x8xf32>
    %cst_48 = arith.constant dense<0xFF800000> : vector<8xf32>
    %123 = vector.multi_reduction <maximumf>, %122, %cst_48 [1] : vector<8x8xf32> to vector<8xf32>
    %124 = vector.shape_cast %123 : vector<8xf32> to vector<8x1xf32>
    %125 = vector.broadcast %124 : vector<8x1xf32> to vector<8x8xf32>
    %126 = arith.subf %122, %125 : vector<8x8xf32>
    %127 = math.exp %126 : vector<8x8xf32>
    %cst_49 = arith.constant dense<0.000000e+00> : vector<8xf32>
    %128 = vector.multi_reduction <add>, %127, %cst_49 [1] : vector<8x8xf32> to vector<8xf32>
    %129 = vector.shape_cast %128 : vector<8xf32> to vector<8x1xf32>
    %130 = tpu.reciprocal %129 {approx = true} : vector<8x1xf32> -> vector<8x1xf32>
    %131 = vector.broadcast %130 : vector<8x1xf32> to vector<8x8xf32>
    %132 = arith.mulf %127, %131 : vector<8x8xf32>
    %cst_50 = arith.constant dense<0.000000e+00> : vector<8x8xf32>
    %133 = tpu.matmul %132, %121, %cst_50 {dimension_numbers = #tpu.dot_dimension_numbers<[1], [0], [0], [1], [0, 0, 1, 1], [], []>} : vector<8x8xf32>, vector<8x8xf32>, vector<8x8xf32> -> vector<8x8xf32>
    %c0_51 = arith.constant 0 : index
    %c16 = arith.constant 16 : index
    %134 = vector.load %arg23[%c0_51, %c16] : memref<8x32xf32, #tpu.memory_space<vmem>>, vector<8x8xf32>
    tpu.vector_store %arg23[%c0_51, %c16], %133 {strides = array<i32>} : memref<8x32xf32, #tpu.memory_space<vmem>>, vector<8x8xf32>,
    %135 = vector.extract_strided_slice %84 {offsets = [0, 24], sizes = [8, 8], strides = [1, 1]} : vector<8x32xf32> to vector<8x8xf32>
    %136 = vector.extract_strided_slice %85 {offsets = [0, 24], sizes = [8, 8], strides = [1, 1]} : vector<8x32xf32> to vector<8x8xf32>
    %137 = vector.extract_strided_slice %86 {offsets = [0, 24], sizes = [8, 8], strides = [1, 1]} : vector<8x32xf32> to vector<8x8xf32>
    %cst_52 = arith.constant dense<0.000000e+00> : vector<8x8xf32>
    %138 = tpu.matmul %135, %136, %cst_52 {dimension_numbers = #tpu.dot_dimension_numbers<[1], [1], [0], [0], [0, 0, 1, 0], [], []>} : vector<8x8xf32>, vector<8x8xf32>, vector<8x8xf32> -> vector<8x8xf32>
    %cst_53 = arith.constant dense<0xFF800000> : vector<8xf32>
    %139 = vector.multi_reduction <maximumf>, %138, %cst_53 [1] : vector<8x8xf32> to vector<8xf32>
    %140 = vector.shape_cast %139 : vector<8xf32> to vector<8x1xf32>
    %141 = vector.broadcast %140 : vector<8x1xf32> to vector<8x8xf32>
    %142 = arith.subf %138, %141 : vector<8x8xf32>
    %143 = math.exp %142 : vector<8x8xf32>
    %cst_54 = arith.constant dense<0.000000e+00> : vector<8xf32>
    %144 = vector.multi_reduction <add>, %143, %cst_54 [1] : vector<8x8xf32> to vector<8xf32>
    %145 = vector.shape_cast %144 : vector<8xf32> to vector<8x1xf32>
    %146 = tpu.reciprocal %145 {approx = true} : vector<8x1xf32> -> vector<8x1xf32>
    %147 = vector.broadcast %146 : vector<8x1xf32> to vector<8x8xf32>
    %148 = arith.mulf %143, %147 : vector<8x8xf32>
    %cst_55 = arith.constant dense<0.000000e+00> : vector<8x8xf32>
    %149 = tpu.matmul %148, %137, %cst_55 {dimension_numbers = #tpu.dot_dimension_numbers<[1], [0], [0], [1], [0, 0, 1, 1], [], []>} : vector<8x8xf32>, vector<8x8xf32>, vector<8x8xf32> -> vector<8x8xf32>
    %c0_56 = arith.constant 0 : index
    %c24 = arith.constant 24 : index
    %150 = vector.load %arg23[%c0_56, %c24] : memref<8x32xf32, #tpu.memory_space<vmem>>, vector<8x8xf32>
    tpu.vector_store %arg23[%c0_56, %c24], %149 {strides = array<i32>} : memref<8x32xf32, #tpu.memory_space<vmem>>, vector<8x8xf32>,
    %c0_57 = arith.constant 0 : index
    %c0_58 = arith.constant 0 : index
    %151 = vector.load %arg23[%c0_57, %c0_58] : memref<8x32xf32, #tpu.memory_space<vmem>>, vector<8x32xf32>
    %152 = arith.truncf %151 : vector<8x32xf32> to vector<8x32xbf16>
    %153 = arith.index_cast %c0_i32 : i32 to index
    %c0_59 = arith.constant 0 : index
    %c0_60 = arith.constant 0 : index
    %154 = vector.load %arg12[%153, %c0_59, %c0_60] : memref<2x32x32xbf16, #tpu.memory_space<vmem>>, vector<1x32x32xbf16>
    %155 = vector.shape_cast %154 : vector<1x32x32xbf16> to vector<32x32xbf16>
    %cst_61 = arith.constant dense<0.000000e+00> : vector<8x32xf32>
    %156 = tpu.matmul %152, %155, %cst_61 {dimension_numbers = #tpu.dot_dimension_numbers<[1], [0], [0], [1], [0, 0, 1, 1], [], []>} : vector<8x32xbf16>, vector<32x32xbf16>, vector<8x32xf32> -> vector<8x32xf32>
    %157 = arith.index_cast %c0_i32 : i32 to index
    %c0_62 = arith.constant 0 : index
    %c0_63 = arith.constant 0 : index
    %158 = vector.load %arg13[%157, %c0_62, %c0_63] : memref<2x1x32xf32, #tpu.memory_space<vmem>>, vector<1x1x32xf32>
    %159 = vector.shape_cast %158 : vector<1x1x32xf32> to vector<1x32xf32>
    %160 = vector.broadcast %159 : vector<1x32xf32> to vector<8x32xf32>
    %161 = arith.addf %156, %160 : vector<8x32xf32>
    %162 = arith.addf %43, %161 : vector<8x32xf32>
    %163 = arith.index_cast %c0_i32 : i32 to index
    %c0_64 = arith.constant 0 : index
    %c0_65 = arith.constant 0 : index
    %164 = vector.load %arg14[%163, %c0_64, %c0_65] : memref<2x1x32xf32, #tpu.memory_space<vmem>>, vector<1x1x32xf32>
    %165 = vector.shape_cast %164 : vector<1x1x32xf32> to vector<1x32xf32>
    %166 = arith.index_cast %c0_i32 : i32 to index
    %c0_66 = arith.constant 0 : index
    %c0_67 = arith.constant 0 : index
    %167 = vector.load %arg15[%166, %c0_66, %c0_67] : memref<2x1x32xf32, #tpu.memory_space<vmem>>, vector<1x1x32xf32>
    %168 = vector.shape_cast %167 : vector<1x1x32xf32> to vector<1x32xf32>
    %cst_68 = arith.constant dense<0.000000e+00> : vector<8xf32>
    %169 = vector.multi_reduction <add>, %162, %cst_68 [1] : vector<8x32xf32> to vector<8xf32>
    %170 = vector.shape_cast %169 : vector<8xf32> to vector<8x1xf32>
    %cst_69 = arith.constant 3.200000e+01 : f32
    %171 = vector.broadcast %cst_69 : f32 to vector<8x1xf32>
    %172 = arith.divf %170, %171 : vector<8x1xf32>
    %173 = vector.broadcast %172 : vector<8x1xf32> to vector<8x32xf32>
    %174 = arith.subf %162, %173 : vector<8x32xf32>
    %175 = arith.mulf %174, %174 : vector<8x32xf32>
    %cst_70 = arith.constant dense<0.000000e+00> : vector<8xf32>
    %176 = vector.multi_reduction <add>, %175, %cst_70 [1] : vector<8x32xf32> to vector<8xf32>
    %177 = vector.shape_cast %176 : vector<8xf32> to vector<8x1xf32>
    %cst_71 = arith.constant 3.200000e+01 : f32
    %178 = vector.broadcast %cst_71 : f32 to vector<8x1xf32>
    %179 = arith.divf %177, %178 : vector<8x1xf32>
    %180 = vector.broadcast %172 : vector<8x1xf32> to vector<8x32xf32>
    %181 = arith.subf %162, %180 : vector<8x32xf32>
    %cst_72 = arith.constant 9.99999974E-6 : f32
    %182 = vector.broadcast %cst_72 : f32 to vector<8x1xf32>
    %183 = arith.addf %179, %182 : vector<8x1xf32>
    %184 = math.rsqrt %183 : vector<8x1xf32>
    %185 = vector.broadcast %184 : vector<8x1xf32> to vector<8x32xf32>
    %186 = arith.mulf %181, %185 : vector<8x32xf32>
    %187 = vector.broadcast %165 : vector<1x32xf32> to vector<8x32xf32>
    %188 = arith.mulf %186, %187 : vector<8x32xf32>
    %189 = vector.broadcast %168 : vector<1x32xf32> to vector<8x32xf32>
    %190 = arith.addf %188, %189 : vector<8x32xf32>
    %191 = arith.truncf %190 : vector<8x32xf32> to vector<8x32xbf16>
    %192 = arith.index_cast %c0_i32 : i32 to index
    %c0_73 = arith.constant 0 : index
    %c0_74 = arith.constant 0 : index
    %193 = vector.load %arg16[%192, %c0_73, %c0_74] : memref<2x32x64xbf16, #tpu.memory_space<vmem>>, vector<1x32x64xbf16>
    %194 = vector.shape_cast %193 : vector<1x32x64xbf16> to vector<32x64xbf16>
    %cst_75 = arith.constant dense<0.000000e+00> : vector<8x64xf32>
    %195 = tpu.matmul %191, %194, %cst_75 {dimension_numbers = #tpu.dot_dimension_numbers<[1], [0], [0], [1], [0, 0, 1, 1], [], []>} : vector<8x32xbf16>, vector<32x64xbf16>, vector<8x64xf32> -> vector<8x64xf32>
    %196 = arith.index_cast %c0_i32 : i32 to index
    %c0_76 = arith.constant 0 : index
    %c0_77 = arith.constant 0 : index
    %197 = vector.load %arg17[%196, %c0_76, %c0_77] : memref<2x1x64xf32, #tpu.memory_space<vmem>>, vector<1x1x64xf32>
    %198 = vector.shape_cast %197 : vector<1x1x64xf32> to vector<1x64xf32>
    %199 = vector.broadcast %198 : vector<1x64xf32> to vector<8x64xf32>
    %200 = arith.addf %195, %199 : vector<8x64xf32>
    %cst_78 = arith.constant 5.000000e-01 : f32
    %201 = vector.broadcast %cst_78 : f32 to vector<8x64xf32>
    %202 = arith.mulf %201, %200 : vector<8x64xf32>
    %cst_79 = arith.constant 4.471500e-02 : f32
    %203 = vector.broadcast %cst_79 : f32 to vector<8x64xf32>
    %204 = arith.mulf %203, %200 : vector<8x64xf32>
    %205 = arith.mulf %204, %200 : vector<8x64xf32>
    %206 = arith.mulf %205, %200 : vector<8x64xf32>
    %207 = arith.addf %200, %206 : vector<8x64xf32>
    %cst_80 = arith.constant 0.797884583 : f32
    %208 = vector.broadcast %cst_80 : f32 to vector<8x64xf32>
    %209 = arith.mulf %208, %207 : vector<8x64xf32>
    %210 = math.tanh %209 : vector<8x64xf32>
    %cst_81 = arith.constant 1.000000e+00 : f32
    %211 = vector.broadcast %cst_81 : f32 to vector<8x64xf32>
    %212 = arith.addf %211, %210 : vector<8x64xf32>
    %213 = arith.mulf %202, %212 : vector<8x64xf32>
    %214 = arith.truncf %213 : vector<8x64xf32> to vector<8x64xbf16>
    %215 = arith.index_cast %c0_i32 : i32 to index
    %c0_82 = arith.constant 0 : index
    %c0_83 = arith.constant 0 : index
    %216 = vector.load %arg18[%215, %c0_82, %c0_83] : memref<2x64x32xbf16, #tpu.memory_space<vmem>>, vector<1x64x32xbf16>
    %217 = vector.shape_cast %216 : vector<1x64x32xbf16> to vector<64x32xbf16>
    %cst_84 = arith.constant dense<0.000000e+00> : vector<8x32xf32>
    %218 = tpu.matmul %214, %217, %cst_84 {dimension_numbers = #tpu.dot_dimension_numbers<[1], [0], [0], [1], [0, 0, 1, 1], [], []>} : vector<8x64xbf16>, vector<64x32xbf16>, vector<8x32xf32> -> vector<8x32xf32>
    %219 = arith.index_cast %c0_i32 : i32 to index
    %c0_85 = arith.constant 0 : index
    %c0_86 = arith.constant 0 : index
    %220 = vector.load %arg19[%219, %c0_85, %c0_86] : memref<2x1x32xf32, #tpu.memory_space<vmem>>, vector<1x1x32xf32>
    %221 = vector.shape_cast %220 : vector<1x1x32xf32> to vector<1x32xf32>
    %222 = vector.broadcast %221 : vector<1x32xf32> to vector<8x32xf32>
    %223 = arith.addf %218, %222 : vector<8x32xf32>
    %224 = arith.addf %162, %223 : vector<8x32xf32>
    %c1_i32 = arith.constant 1 : i32
    %225 = arith.index_cast %c1_i32 : i32 to index
    %c0_87 = arith.constant 0 : index
    %c0_88 = arith.constant 0 : index
    %226 = vector.load %arg8[%225, %c0_87, %c0_88] : memref<2x1x32xf32, #tpu.memory_space<vmem>>, vector<1x1x32xf32>
    %227 = vector.shape_cast %226 : vector<1x1x32xf32> to vector<1x32xf32>
    %228 = arith.index_cast %c1_i32 : i32 to index
    %c0_89 = arith.constant 0 : index
    %c0_90 = arith.constant 0 : index
    %229 = vector.load %arg9[%228, %c0_89, %c0_90] : memref<2x1x32xf32, #tpu.memory_space<vmem>>, vector<1x1x32xf32>
    %230 = vector.shape_cast %229 : vector<1x1x32xf32> to vector<1x32xf32>
    %cst_91 = arith.constant dense<0.000000e+00> : vector<8xf32>
    %231 = vector.multi_reduction <add>, %224, %cst_91 [1] : vector<8x32xf32> to vector<8xf32>
    %232 = vector.shape_cast %231 : vector<8xf32> to vector<8x1xf32>
    %cst_92 = arith.constant 3.200000e+01 : f32
    %233 = vector.broadcast %cst_92 : f32 to vector<8x1xf32>
    %234 = arith.divf %232, %233 : vector<8x1xf32>
    %235 = vector.broadcast %234 : vector<8x1xf32> to vector<8x32xf32>
    %236 = arith.subf %224, %235 : vector<8x32xf32>
    %237 = arith.mulf %236, %236 : vector<8x32xf32>
    %cst_93 = arith.constant dense<0.000000e+00> : vector<8xf32>
    %238 = vector.multi_reduction <add>, %237, %cst_93 [1] : vector<8x32xf32> to vector<8xf32>
    %239 = vector.shape_cast %238 : vector<8xf32> to vector<8x1xf32>
    %cst_94 = arith.constant 3.200000e+01 : f32
    %240 = vector.broadcast %cst_94 : f32 to vector<8x1xf32>
    %241 = arith.divf %239, %240 : vector<8x1xf32>
    %242 = vector.broadcast %234 : vector<8x1xf32> to vector<8x32xf32>
    %243 = arith.subf %224, %242 : vector<8x32xf32>
    %cst_95 = arith.constant 9.99999974E-6 : f32
    %244 = vector.broadcast %cst_95 : f32 to vector<8x1xf32>
    %245 = arith.addf %241, %244 : vector<8x1xf32>
    %246 = math.rsqrt %245 : vector<8x1xf32>
    %247 = vector.broadcast %246 : vector<8x1xf32> to vector<8x32xf32>
    %248 = arith.mulf %243, %247 : vector<8x32xf32>
    %249 = vector.broadcast %227 : vector<1x32xf32> to vector<8x32xf32>
    %250 = arith.mulf %248, %249 : vector<8x32xf32>
    %251 = vector.broadcast %230 : vector<1x32xf32> to vector<8x32xf32>
    %252 = arith.addf %250, %251 : vector<8x32xf32>
    %253 = arith.truncf %252 : vector<8x32xf32> to vector<8x32xbf16>
    %254 = arith.index_cast %c1_i32 : i32 to index
    %c0_96 = arith.constant 0 : index
    %c0_97 = arith.constant 0 : index
    %255 = vector.load %arg10[%254, %c0_96, %c0_97] : memref<2x32x96xbf16, #tpu.memory_space<vmem>>, vector<1x32x96xbf16>
    %256 = vector.shape_cast %255 : vector<1x32x96xbf16> to vector<32x96xbf16>
    %cst_98 = arith.constant dense<0.000000e+00> : vector<8x96xf32>
    %257 = tpu.matmul %253, %256, %cst_98 {dimension_numbers = #tpu.dot_dimension_numbers<[1], [0], [0], [1], [0, 0, 1, 1], [], []>} : vector<8x32xbf16>, vector<32x96xbf16>, vector<8x96xf32> -> vector<8x96xf32>
    %258 = arith.index_cast %c1_i32 : i32 to index
    %c0_99 = arith.constant 0 : index
    %c0_100 = arith.constant 0 : index
    %259 = vector.load %arg11[%258, %c0_99, %c0_100] : memref<2x1x96xf32, #tpu.memory_space<vmem>>, vector<1x1x96xf32>
    %260 = vector.shape_cast %259 : vector<1x1x96xf32> to vector<1x96xf32>
    %261 = vector.broadcast %260 : vector<1x96xf32> to vector<8x96xf32>
    %262 = arith.addf %257, %261 : vector<8x96xf32>
    %263 = vector.extract_strided_slice %262 {offsets = [0, 0], sizes = [8, 32], strides = [1, 1]} : vector<8x96xf32> to vector<8x32xf32>
    %cst_101 = arith.constant 0.353553385 : f32
    %264 = vector.broadcast %cst_101 : f32 to vector<8x32xf32>
    %265 = arith.mulf %263, %264 : vector<8x32xf32>
    %266 = vector.extract_strided_slice %262 {offsets = [0, 32], sizes = [8, 32], strides = [1, 1]} : vector<8x96xf32> to vector<8x32xf32>
    %267 = vector.extract_strided_slice %262 {offsets = [0, 64], sizes = [8, 32], strides = [1, 1]} : vector<8x96xf32> to vector<8x32xf32>
    %268 = vector.extract_strided_slice %265 {offsets = [0, 0], sizes = [8, 8], strides = [1, 1]} : vector<8x32xf32> to vector<8x8xf32>
    %269 = vector.extract_strided_slice %266 {offsets = [0, 0], sizes = [8, 8], strides = [1, 1]} : vector<8x32xf32> to vector<8x8xf32>
    %270 = vector.extract_strided_slice %267 {offsets = [0, 0], sizes = [8, 8], strides = [1, 1]} : vector<8x32xf32> to vector<8x8xf32>
    %cst_102 = arith.constant dense<0.000000e+00> : vector<8x8xf32>
    %271 = tpu.matmul %268, %269, %cst_102 {dimension_numbers = #tpu.dot_dimension_numbers<[1], [1], [0], [0], [0, 0, 1, 0], [], []>} : vector<8x8xf32>, vector<8x8xf32>, vector<8x8xf32> -> vector<8x8xf32>
    %cst_103 = arith.constant dense<0xFF800000> : vector<8xf32>
    %272 = vector.multi_reduction <maximumf>, %271, %cst_103 [1] : vector<8x8xf32> to vector<8xf32>
    %273 = vector.shape_cast %272 : vector<8xf32> to vector<8x1xf32>
    %274 = vector.broadcast %273 : vector<8x1xf32> to vector<8x8xf32>
    %275 = arith.subf %271, %274 : vector<8x8xf32>
    %276 = math.exp %275 : vector<8x8xf32>
    %cst_104 = arith.constant dense<0.000000e+00> : vector<8xf32>
    %277 = vector.multi_reduction <add>, %276, %cst_104 [1] : vector<8x8xf32> to vector<8xf32>
    %278 = vector.shape_cast %277 : vector<8xf32> to vector<8x1xf32>
    %279 = tpu.reciprocal %278 {approx = true} : vector<8x1xf32> -> vector<8x1xf32>
    %280 = vector.broadcast %279 : vector<8x1xf32> to vector<8x8xf32>
    %281 = arith.mulf %276, %280 : vector<8x8xf32>
    %cst_105 = arith.constant dense<0.000000e+00> : vector<8x8xf32>
    %282 = tpu.matmul %281, %270, %cst_105 {dimension_numbers = #tpu.dot_dimension_numbers<[1], [0], [0], [1], [0, 0, 1, 1], [], []>} : vector<8x8xf32>, vector<8x8xf32>, vector<8x8xf32> -> vector<8x8xf32>
    %c0_106 = arith.constant 0 : index
    %c0_107 = arith.constant 0 : index
    %283 = vector.load %arg23[%c0_106, %c0_107] : memref<8x32xf32, #tpu.memory_space<vmem>>, vector<8x8xf32>
    tpu.vector_store %arg23[%c0_106, %c0_107], %282 {strides = array<i32>} : memref<8x32xf32, #tpu.memory_space<vmem>>, vector<8x8xf32>,
    %284 = vector.extract_strided_slice %265 {offsets = [0, 8], sizes = [8, 8], strides = [1, 1]} : vector<8x32xf32> to vector<8x8xf32>
    %285 = vector.extract_strided_slice %266 {offsets = [0, 8], sizes = [8, 8], strides = [1, 1]} : vector<8x32xf32> to vector<8x8xf32>
    %286 = vector.extract_strided_slice %267 {offsets = [0, 8], sizes = [8, 8], strides = [1, 1]} : vector<8x32xf32> to vector<8x8xf32>
    %cst_108 = arith.constant dense<0.000000e+00> : vector<8x8xf32>
    %287 = tpu.matmul %284, %285, %cst_108 {dimension_numbers = #tpu.dot_dimension_numbers<[1], [1], [0], [0], [0, 0, 1, 0], [], []>} : vector<8x8xf32>, vector<8x8xf32>, vector<8x8xf32> -> vector<8x8xf32>
    %cst_109 = arith.constant dense<0xFF800000> : vector<8xf32>
    %288 = vector.multi_reduction <maximumf>, %287, %cst_109 [1] : vector<8x8xf32> to vector<8xf32>
    %289 = vector.shape_cast %288 : vector<8xf32> to vector<8x1xf32>
    %290 = vector.broadcast %289 : vector<8x1xf32> to vector<8x8xf32>
    %291 = arith.subf %287, %290 : vector<8x8xf32>
    %292 = math.exp %291 : vector<8x8xf32>
    %cst_110 = arith.constant dense<0.000000e+00> : vector<8xf32>
    %293 = vector.multi_reduction <add>, %292, %cst_110 [1] : vector<8x8xf32> to vector<8xf32>
    %294 = vector.shape_cast %293 : vector<8xf32> to vector<8x1xf32>
    %295 = tpu.reciprocal %294 {approx = true} : vector<8x1xf32> -> vector<8x1xf32>
    %296 = vector.broadcast %295 : vector<8x1xf32> to vector<8x8xf32>
    %297 = arith.mulf %292, %296 : vector<8x8xf32>
    %cst_111 = arith.constant dense<0.000000e+00> : vector<8x8xf32>
    %298 = tpu.matmul %297, %286, %cst_111 {dimension_numbers = #tpu.dot_dimension_numbers<[1], [0], [0], [1], [0, 0, 1, 1], [], []>} : vector<8x8xf32>, vector<8x8xf32>, vector<8x8xf32> -> vector<8x8xf32>
    %c0_112 = arith.constant 0 : index
    %c8_113 = arith.constant 8 : index
    %299 = vector.load %arg23[%c0_112, %c8_113] : memref<8x32xf32, #tpu.memory_space<vmem>>, vector<8x8xf32>
    tpu.vector_store %arg23[%c0_112, %c8_113], %298 {strides = array<i32>} : memref<8x32xf32, #tpu.memory_space<vmem>>, vector<8x8xf32>,
    %300 = vector.extract_strided_slice %265 {offsets = [0, 16], sizes = [8, 8], strides = [1, 1]} : vector<8x32xf32> to vector<8x8xf32>
    %301 = vector.extract_strided_slice %266 {offsets = [0, 16], sizes = [8, 8], strides = [1, 1]} : vector<8x32xf32> to vector<8x8xf32>
    %302 = vector.extract_strided_slice %267 {offsets = [0, 16], sizes = [8, 8], strides = [1, 1]} : vector<8x32xf32> to vector<8x8xf32>
    %cst_114 = arith.constant dense<0.000000e+00> : vector<8x8xf32>
    %303 = tpu.matmul %300, %301, %cst_114 {dimension_numbers = #tpu.dot_dimension_numbers<[1], [1], [0], [0], [0, 0, 1, 0], [], []>} : vector<8x8xf32>, vector<8x8xf32>, vector<8x8xf32> -> vector<8x8xf32>
    %cst_115 = arith.constant dense<0xFF800000> : vector<8xf32>
    %304 = vector.multi_reduction <maximumf>, %303, %cst_115 [1] : vector<8x8xf32> to vector<8xf32>
    %305 = vector.shape_cast %304 : vector<8xf32> to vector<8x1xf32>
    %306 = vector.broadcast %305 : vector<8x1xf32> to vector<8x8xf32>
    %307 = arith.subf %303, %306 : vector<8x8xf32>
    %308 = math.exp %307 : vector<8x8xf32>
    %cst_116 = arith.constant dense<0.000000e+00> : vector<8xf32>
    %309 = vector.multi_reduction <add>, %308, %cst_116 [1] : vector<8x8xf32> to vector<8xf32>
    %310 = vector.shape_cast %309 : vector<8xf32> to vector<8x1xf32>
    %311 = tpu.reciprocal %310 {approx = true} : vector<8x1xf32> -> vector<8x1xf32>
    %312 = vector.broadcast %311 : vector<8x1xf32> to vector<8x8xf32>
    %313 = arith.mulf %308, %312 : vector<8x8xf32>
    %cst_117 = arith.constant dense<0.000000e+00> : vector<8x8xf32>
    %314 = tpu.matmul %313, %302, %cst_117 {dimension_numbers = #tpu.dot_dimension_numbers<[1], [0], [0], [1], [0, 0, 1, 1], [], []>} : vector<8x8xf32>, vector<8x8xf32>, vector<8x8xf32> -> vector<8x8xf32>
    %c0_118 = arith.constant 0 : index
    %c16_119 = arith.constant 16 : index
    %315 = vector.load %arg23[%c0_118, %c16_119] : memref<8x32xf32, #tpu.memory_space<vmem>>, vector<8x8xf32>
    tpu.vector_store %arg23[%c0_118, %c16_119], %314 {strides = array<i32>} : memref<8x32xf32, #tpu.memory_space<vmem>>, vector<8x8xf32>,
    %316 = vector.extract_strided_slice %265 {offsets = [0, 24], sizes = [8, 8], strides = [1, 1]} : vector<8x32xf32> to vector<8x8xf32>
    %317 = vector.extract_strided_slice %266 {offsets = [0, 24], sizes = [8, 8], strides = [1, 1]} : vector<8x32xf32> to vector<8x8xf32>
    %318 = vector.extract_strided_slice %267 {offsets = [0, 24], sizes = [8, 8], strides = [1, 1]} : vector<8x32xf32> to vector<8x8xf32>
    %cst_120 = arith.constant dense<0.000000e+00> : vector<8x8xf32>
    %319 = tpu.matmul %316, %317, %cst_120 {dimension_numbers = #tpu.dot_dimension_numbers<[1], [1], [0], [0], [0, 0, 1, 0], [], []>} : vector<8x8xf32>, vector<8x8xf32>, vector<8x8xf32> -> vector<8x8xf32>
    %cst_121 = arith.constant dense<0xFF800000> : vector<8xf32>
    %320 = vector.multi_reduction <maximumf>, %319, %cst_121 [1] : vector<8x8xf32> to vector<8xf32>
    %321 = vector.shape_cast %320 : vector<8xf32> to vector<8x1xf32>
    %322 = vector.broadcast %321 : vector<8x1xf32> to vector<8x8xf32>
    %323 = arith.subf %319, %322 : vector<8x8xf32>
    %324 = math.exp %323 : vector<8x8xf32>
    %cst_122 = arith.constant dense<0.000000e+00> : vector<8xf32>
    %325 = vector.multi_reduction <add>, %324, %cst_122 [1] : vector<8x8xf32> to vector<8xf32>
    %326 = vector.shape_cast %325 : vector<8xf32> to vector<8x1xf32>
    %327 = tpu.reciprocal %326 {approx = true} : vector<8x1xf32> -> vector<8x1xf32>
    %328 = vector.broadcast %327 : vector<8x1xf32> to vector<8x8xf32>
    %329 = arith.mulf %324, %328 : vector<8x8xf32>
    %cst_123 = arith.constant dense<0.000000e+00> : vector<8x8xf32>
    %330 = tpu.matmul %329, %318, %cst_123 {dimension_numbers = #tpu.dot_dimension_numbers<[1], [0], [0], [1], [0, 0, 1, 1], [], []>} : vector<8x8xf32>, vector<8x8xf32>, vector<8x8xf32> -> vector<8x8xf32>
    %c0_124 = arith.constant 0 : index
    %c24_125 = arith.constant 24 : index
    %331 = vector.load %arg23[%c0_124, %c24_125] : memref<8x32xf32, #tpu.memory_space<vmem>>, vector<8x8xf32>
    tpu.vector_store %arg23[%c0_124, %c24_125], %330 {strides = array<i32>} : memref<8x32xf32, #tpu.memory_space<vmem>>, vector<8x8xf32>,
    %c0_126 = arith.constant 0 : index
    %c0_127 = arith.constant 0 : index
    %332 = vector.load %arg23[%c0_126, %c0_127] : memref<8x32xf32, #tpu.memory_space<vmem>>, vector<8x32xf32>
    %333 = arith.truncf %332 : vector<8x32xf32> to vector<8x32xbf16>
    %334 = arith.index_cast %c1_i32 : i32 to index
    %c0_128 = arith.constant 0 : index
    %c0_129 = arith.constant 0 : index
    %335 = vector.load %arg12[%334, %c0_128, %c0_129] : memref<2x32x32xbf16, #tpu.memory_space<vmem>>, vector<1x32x32xbf16>
    %336 = vector.shape_cast %335 : vector<1x32x32xbf16> to vector<32x32xbf16>
    %cst_130 = arith.constant dense<0.000000e+00> : vector<8x32xf32>
    %337 = tpu.matmul %333, %336, %cst_130 {dimension_numbers = #tpu.dot_dimension_numbers<[1], [0], [0], [1], [0, 0, 1, 1], [], []>} : vector<8x32xbf16>, vector<32x32xbf16>, vector<8x32xf32> -> vector<8x32xf32>
    %338 = arith.index_cast %c1_i32 : i32 to index
    %c0_131 = arith.constant 0 : index
    %c0_132 = arith.constant 0 : index
    %339 = vector.load %arg13[%338, %c0_131, %c0_132] : memref<2x1x32xf32, #tpu.memory_space<vmem>>, vector<1x1x32xf32>
    %340 = vector.shape_cast %339 : vector<1x1x32xf32> to vector<1x32xf32>
    %341 = vector.broadcast %340 : vector<1x32xf32> to vector<8x32xf32>
    %342 = arith.addf %337, %341 : vector<8x32xf32>
    %343 = arith.addf %224, %342 : vector<8x32xf32>
    %344 = arith.index_cast %c1_i32 : i32 to index
    %c0_133 = arith.constant 0 : index
    %c0_134 = arith.constant 0 : index
    %345 = vector.load %arg14[%344, %c0_133, %c0_134] : memref<2x1x32xf32, #tpu.memory_space<vmem>>, vector<1x1x32xf32>
    %346 = vector.shape_cast %345 : vector<1x1x32xf32> to vector<1x32xf32>
    %347 = arith.index_cast %c1_i32 : i32 to index
    %c0_135 = arith.constant 0 : index
    %c0_136 = arith.constant 0 : index
    %348 = vector.load %arg15[%347, %c0_135, %c0_136] : memref<2x1x32xf32, #tpu.memory_space<vmem>>, vector<1x1x32xf32>
    %349 = vector.shape_cast %348 : vector<1x1x32xf32> to vector<1x32xf32>
    %cst_137 = arith.constant dense<0.000000e+00> : vector<8xf32>
    %350 = vector.multi_reduction <add>, %343, %cst_137 [1] : vector<8x32xf32> to vector<8xf32>
    %351 = vector.shape_cast %350 : vector<8xf32> to vector<8x1xf32>
    %cst_138 = arith.constant 3.200000e+01 : f32
    %352 = vector.broadcast %cst_138 : f32 to vector<8x1xf32>
    %353 = arith.divf %351, %352 : vector<8x1xf32>
    %354 = vector.broadcast %353 : vector<8x1xf32> to vector<8x32xf32>
    %355 = arith.subf %343, %354 : vector<8x32xf32>
    %356 = arith.mulf %355, %355 : vector<8x32xf32>
    %cst_139 = arith.constant dense<0.000000e+00> : vector<8xf32>
    %357 = vector.multi_reduction <add>, %356, %cst_139 [1] : vector<8x32xf32> to vector<8xf32>
    %358 = vector.shape_cast %357 : vector<8xf32> to vector<8x1xf32>
    %cst_140 = arith.constant 3.200000e+01 : f32
    %359 = vector.broadcast %cst_140 : f32 to vector<8x1xf32>
    %360 = arith.divf %358, %359 : vector<8x1xf32>
    %361 = vector.broadcast %353 : vector<8x1xf32> to vector<8x32xf32>
    %362 = arith.subf %343, %361 : vector<8x32xf32>
    %cst_141 = arith.constant 9.99999974E-6 : f32
    %363 = vector.broadcast %cst_141 : f32 to vector<8x1xf32>
    %364 = arith.addf %360, %363 : vector<8x1xf32>
    %365 = math.rsqrt %364 : vector<8x1xf32>
    %366 = vector.broadcast %365 : vector<8x1xf32> to vector<8x32xf32>
    %367 = arith.mulf %362, %366 : vector<8x32xf32>
    %368 = vector.broadcast %346 : vector<1x32xf32> to vector<8x32xf32>
    %369 = arith.mulf %367, %368 : vector<8x32xf32>
    %370 = vector.broadcast %349 : vector<1x32xf32> to vector<8x32xf32>
    %371 = arith.addf %369, %370 : vector<8x32xf32>
    %372 = arith.truncf %371 : vector<8x32xf32> to vector<8x32xbf16>
    %373 = arith.index_cast %c1_i32 : i32 to index
    %c0_142 = arith.constant 0 : index
    %c0_143 = arith.constant 0 : index
    %374 = vector.load %arg16[%373, %c0_142, %c0_143] : memref<2x32x64xbf16, #tpu.memory_space<vmem>>, vector<1x32x64xbf16>
    %375 = vector.shape_cast %374 : vector<1x32x64xbf16> to vector<32x64xbf16>
    %cst_144 = arith.constant dense<0.000000e+00> : vector<8x64xf32>
    %376 = tpu.matmul %372, %375, %cst_144 {dimension_numbers = #tpu.dot_dimension_numbers<[1], [0], [0], [1], [0, 0, 1, 1], [], []>} : vector<8x32xbf16>, vector<32x64xbf16>, vector<8x64xf32> -> vector<8x64xf32>
    %377 = arith.index_cast %c1_i32 : i32 to index
    %c0_145 = arith.constant 0 : index
    %c0_146 = arith.constant 0 : index
    %378 = vector.load %arg17[%377, %c0_145, %c0_146] : memref<2x1x64xf32, #tpu.memory_space<vmem>>, vector<1x1x64xf32>
    %379 = vector.shape_cast %378 : vector<1x1x64xf32> to vector<1x64xf32>
    %380 = vector.broadcast %379 : vector<1x64xf32> to vector<8x64xf32>
    %381 = arith.addf %376, %380 : vector<8x64xf32>
    %cst_147 = arith.constant 5.000000e-01 : f32
    %382 = vector.broadcast %cst_147 : f32 to vector<8x64xf32>
    %383 = arith.mulf %382, %381 : vector<8x64xf32>
    %cst_148 = arith.constant 4.471500e-02 : f32
    %384 = vector.broadcast %cst_148 : f32 to vector<8x64xf32>
    %385 = arith.mulf %384, %381 : vector<8x64xf32>
    %386 = arith.mulf %385, %381 : vector<8x64xf32>
    %387 = arith.mulf %386, %381 : vector<8x64xf32>
    %388 = arith.addf %381, %387 : vector<8x64xf32>
    %cst_149 = arith.constant 0.797884583 : f32
    %389 = vector.broadcast %cst_149 : f32 to vector<8x64xf32>
    %390 = arith.mulf %389, %388 : vector<8x64xf32>
    %391 = math.tanh %390 : vector<8x64xf32>
    %cst_150 = arith.constant 1.000000e+00 : f32
    %392 = vector.broadcast %cst_150 : f32 to vector<8x64xf32>
    %393 = arith.addf %392, %391 : vector<8x64xf32>
    %394 = arith.mulf %383, %393 : vector<8x64xf32>
    %395 = arith.truncf %394 : vector<8x64xf32> to vector<8x64xbf16>
    %396 = arith.index_cast %c1_i32 : i32 to index
    %c0_151 = arith.constant 0 : index
    %c0_152 = arith.constant 0 : index
    %397 = vector.load %arg18[%396, %c0_151, %c0_152] : memref<2x64x32xbf16, #tpu.memory_space<vmem>>, vector<1x64x32xbf16>
    %398 = vector.shape_cast %397 : vector<1x64x32xbf16> to vector<64x32xbf16>
    %cst_153 = arith.constant dense<0.000000e+00> : vector<8x32xf32>
    %399 = tpu.matmul %395, %398, %cst_153 {dimension_numbers = #tpu.dot_dimension_numbers<[1], [0], [0], [1], [0, 0, 1, 1], [], []>} : vector<8x64xbf16>, vector<64x32xbf16>, vector<8x32xf32> -> vector<8x32xf32>
    %400 = arith.index_cast %c1_i32 : i32 to index
    %c0_154 = arith.constant 0 : index
    %c0_155 = arith.constant 0 : index
    %401 = vector.load %arg19[%400, %c0_154, %c0_155] : memref<2x1x32xf32, #tpu.memory_space<vmem>>, vector<1x1x32xf32>
    %402 = vector.shape_cast %401 : vector<1x1x32xf32> to vector<1x32xf32>
    %403 = vector.broadcast %402 : vector<1x32xf32> to vector<8x32xf32>
    %404 = arith.addf %399, %403 : vector<8x32xf32>
    %405 = arith.addf %343, %404 : vector<8x32xf32>
    %c2_i32 = arith.constant 2 : i32
    %c0_156 = arith.constant 0 : index
    %c0_157 = arith.constant 0 : index
    %406 = vector.load %arg20[%c0_156, %c0_157] : memref<1x32xf32, #tpu.memory_space<vmem>>, vector<1x32xf32>
    %c0_158 = arith.constant 0 : index
    %c0_159 = arith.constant 0 : index
    %407 = vector.load %arg21[%c0_158, %c0_159] : memref<1x32xf32, #tpu.memory_space<vmem>>, vector<1x32xf32>
    %cst_160 = arith.constant dense<0.000000e+00> : vector<8xf32>
    %408 = vector.multi_reduction <add>, %405, %cst_160 [1] : vector<8x32xf32> to vector<8xf32>
    %409 = vector.shape_cast %408 : vector<8xf32> to vector<8x1xf32>
    %cst_161 = arith.constant 3.200000e+01 : f32
    %410 = vector.broadcast %cst_161 : f32 to vector<8x1xf32>
    %411 = arith.divf %409, %410 : vector<8x1xf32>
    %412 = vector.broadcast %411 : vector<8x1xf32> to vector<8x32xf32>
    %413 = arith.subf %405, %412 : vector<8x32xf32>
    %414 = arith.mulf %413, %413 : vector<8x32xf32>
    %cst_162 = arith.constant dense<0.000000e+00> : vector<8xf32>
    %415 = vector.multi_reduction <add>, %414, %cst_162 [1] : vector<8x32xf32> to vector<8xf32>
    %416 = vector.shape_cast %415 : vector<8xf32> to vector<8x1xf32>
    %cst_163 = arith.constant 3.200000e+01 : f32
    %417 = vector.broadcast %cst_163 : f32 to vector<8x1xf32>
    %418 = arith.divf %416, %417 : vector<8x1xf32>
    %419 = vector.broadcast %411 : vector<8x1xf32> to vector<8x32xf32>
    %420 = arith.subf %405, %419 : vector<8x32xf32>
    %cst_164 = arith.constant 9.99999974E-6 : f32
    %421 = vector.broadcast %cst_164 : f32 to vector<8x1xf32>
    %422 = arith.addf %418, %421 : vector<8x1xf32>
    %423 = math.rsqrt %422 : vector<8x1xf32>
    %424 = vector.broadcast %423 : vector<8x1xf32> to vector<8x32xf32>
    %425 = arith.mulf %420, %424 : vector<8x32xf32>
    %426 = vector.broadcast %406 : vector<1x32xf32> to vector<8x32xf32>
    %427 = arith.mulf %425, %426 : vector<8x32xf32>
    %428 = vector.broadcast %407 : vector<1x32xf32> to vector<8x32xf32>
    %429 = arith.addf %427, %428 : vector<8x32xf32>
    %c0_165 = arith.constant 0 : index
    %c0_166 = arith.constant 0 : index
    %430 = vector.load %arg22[%c0_165, %c0_166] : memref<8x32xf32, #tpu.memory_space<vmem>>, vector<8x32xf32>
    tpu.vector_store %arg22[%c0_165, %c0_166], %429 {strides = array<i32>} : memref<8x32xf32, #tpu.memory_space<vmem>>, vector<8x32xf32>,
    return
  }
  func.func @transform_0(%arg0: i32) -> (i32, i32) {
    %c0_i32 = arith.constant 0 : i32
    %c0_i32_0 = arith.constant 0 : i32
    return %arg0, %c0_i32 : i32, i32
  }
  func.func @transform_1(%arg0: i32) -> (i32, i32) {
    %c0_i32 = arith.constant 0 : i32
    %c0_i32_0 = arith.constant 0 : i32
    %c0_i32_1 = arith.constant 0 : i32
    return %c0_i32, %c0_i32_0 : i32, i32
  }
  func.func @transform_2(%arg0: i32) -> (i32, i32) {
    %c0_i32 = arith.constant 0 : i32
    %c0_i32_0 = arith.constant 0 : i32
    %c0_i32_1 = arith.constant 0 : i32
    return %c0_i32, %c0_i32_0 : i32, i32
  }
  func.func @transform_3(%arg0: i32) -> (i32, i32) {
    %c0_i32 = arith.constant 0 : i32
    %c0_i32_0 = arith.constant 0 : i32
    %c0_i32_1 = arith.constant 0 : i32
    return %c0_i32, %c0_i32_0 : i32, i32
  }
  func.func @transform_4(%arg0: i32) -> (i32, i32) {
    %c0_i32 = arith.constant 0 : i32
    %c0_i32_0 = arith.constant 0 : i32
    %c0_i32_1 = arith.constant 0 : i32
    return %c0_i32, %c0_i32_0 : i32, i32
  }
  func.func @transform_5(%arg0: i32) -> (i32, i32) {
    %c0_i32 = arith.constant 0 : i32
    %c0_i32_0 = arith.constant 0 : i32
    %c0_i32_1 = arith.constant 0 : i32
    return %c0_i32, %c0_i32_0 : i32, i32
  }
  func.func @transform_6(%arg0: i32) -> (i32, i32) {
    %c0_i32 = arith.constant 0 : i32
    %c0_i32_0 = arith.constant 0 : i32
    %c0_i32_1 = arith.constant 0 : i32
    return %c0_i32, %c0_i32_0 : i32, i32
  }
  func.func @transform_7(%arg0: i32) -> (i32, i32, i32) {
    %c0_i32 = arith.constant 0 : i32
    %c0_i32_0 = arith.constant 0 : i32
    %c0_i32_1 = arith.constant 0 : i32
    %c0_i32_2 = arith.constant 0 : i32
    return %c0_i32, %c0_i32_0, %c0_i32_1 : i32, i32, i32
  }
  func.func @transform_8(%arg0: i32) -> (i32, i32, i32) {
    %c0_i32 = arith.constant 0 : i32
    %c0_i32_0 = arith.constant 0 : i32
    %c0_i32_1 = arith.constant 0 : i32
    %c0_i32_2 = arith.constant 0 : i32
    return %c0_i32, %c0_i32_0, %c0_i32_1 : i32, i32, i32
  }
  func.func @transform_9(%arg0: i32) -> (i32, i32, i32) {
    %c0_i32 = arith.constant 0 : i32
    %c0_i32_0 = arith.constant 0 : i32
    %c0_i32_1 = arith.constant 0 : i32
    %c0_i32_2 = arith.constant 0 : i32
    return %c0_i32, %c0_i32_0, %c0_i32_1 : i32, i32, i32
  }
  func.func @transform_10(%arg0: i32) -> (i32, i32, i32) {
    %c0_i32 = arith.constant 0 : i32
    %c0_i32_0 = arith.constant 0 : i32
    %c0_i32_1 = arith.constant 0 : i32
    %c0_i32_2 = arith.constant 0 : i32
    return %c0_i32, %c0_i32_0, %c0_i32_1 : i32, i32, i32
  }
  func.func @transform_11(%arg0: i32) -> (i32, i32, i32) {
    %c0_i32 = arith.constant 0 : i32
    %c0_i32_0 = arith.constant 0 : i32
    %c0_i32_1 = arith.constant 0 : i32
    %c0_i32_2 = arith.constant 0 : i32
    return %c0_i32, %c0_i32_0, %c0_i32_1 : i32, i32, i32
  }
  func.func @transform_12(%arg0: i32) -> (i32, i32, i32) {
    %c0_i32 = arith.constant 0 : i32
    %c0_i32_0 = arith.constant 0 : i32
    %c0_i32_1 = arith.constant 0 : i32
    %c0_i32_2 = arith.constant 0 : i32
    return %c0_i32, %c0_i32_0, %c0_i32_1 : i32, i32, i32
  }
  func.func @transform_13(%arg0: i32) -> (i32, i32, i32) {
    %c0_i32 = arith.constant 0 : i32
    %c0_i32_0 = arith.constant 0 : i32
    %c0_i32_1 = arith.constant 0 : i32
    %c0_i32_2 = arith.constant 0 : i32
    return %c0_i32, %c0_i32_0, %c0_i32_1 : i32, i32, i32
  }
  func.func @transform_14(%arg0: i32) -> (i32, i32, i32) {
    %c0_i32 = arith.constant 0 : i32
    %c0_i32_0 = arith.constant 0 : i32
    %c0_i32_1 = arith.constant 0 : i32
    %c0_i32_2 = arith.constant 0 : i32
    return %c0_i32, %c0_i32_0, %c0_i32_1 : i32, i32, i32
  }
  func.func @transform_15(%arg0: i32) -> (i32, i32, i32) {
    %c0_i32 = arith.constant 0 : i32
    %c0_i32_0 = arith.constant 0 : i32
    %c0_i32_1 = arith.constant 0 : i32
    %c0_i32_2 = arith.constant 0 : i32
    return %c0_i32, %c0_i32_0, %c0_i32_1 : i32, i32, i32
  }
  func.func @transform_16(%arg0: i32) -> (i32, i32, i32) {
    %c0_i32 = arith.constant 0 : i32
    %c0_i32_0 = arith.constant 0 : i32
    %c0_i32_1 = arith.constant 0 : i32
    %c0_i32_2 = arith.constant 0 : i32
    return %c0_i32, %c0_i32_0, %c0_i32_1 : i32, i32, i32
  }
  func.func @transform_17(%arg0: i32) -> (i32, i32, i32) {
    %c0_i32 = arith.constant 0 : i32
    %c0_i32_0 = arith.constant 0 : i32
    %c0_i32_1 = arith.constant 0 : i32
    %c0_i32_2 = arith.constant 0 : i32
    return %c0_i32, %c0_i32_0, %c0_i32_1 : i32, i32, i32
  }
  func.func @transform_18(%arg0: i32) -> (i32, i32, i32) {
    %c0_i32 = arith.constant 0 : i32
    %c0_i32_0 = arith.constant 0 : i32
    %c0_i32_1 = arith.constant 0 : i32
    %c0_i32_2 = arith.constant 0 : i32
    return %c0_i32, %c0_i32_0, %c0_i32_1 : i32, i32, i32
  }
  func.func @transform_19(%arg0: i32) -> (i32, i32) {
    %c0_i32 = arith.constant 0 : i32
    %c0_i32_0 = arith.constant 0 : i32
    %c0_i32_1 = arith.constant 0 : i32
    return %c0_i32, %c0_i32_0 : i32, i32
  }
  func.func @transform_20(%arg0: i32) -> (i32, i32) {
    %c0_i32 = arith.constant 0 : i32
    %c0_i32_0 = arith.constant 0 : i32
    %c0_i32_1 = arith.constant 0 : i32
    return %c0_i32, %c0_i32_0 : i32, i32
  }
  func.func @transform_21(%arg0: i32) -> (i32, i32) {
    %c0_i32 = arith.constant 0 : i32
    %c0_i32_0 = arith.constant 0 : i32
    return %arg0, %c0_i32 : i32, i32
  }
}

</mosaic_0001>

<bundles_post_ra>
// kernel: tpu_custom_call.1
= control target key start
LH: loop header
LB: loop body
LE: loop exit
PB: predicated region body
PF: predicated region fallthrough
CT: control target
= control target key end

     0   :  { %s4792_s0 = inlined_call_operand.vmem [shape: f32[16,2], index: 0, kind: input, shape index: {}]   ;;  %s4793_s1 = inlined_call_operand.vmem [shape: f32[2,32], index: 1, kind: input, shape index: {}]   ;;  %s4794_s2 = inlined_call_operand.hbm [shape: f32[1,32], index: 2, kind: input, shape index: {}]   ;;  %s4795_s3 = inlined_call_operand.hbm [shape: f32[1,32], index: 3, kind: input, shape index: {}]   ;;  %s4796_s4 = inlined_call_operand.hbm [shape: f32[1,32], index: 4, kind: input, shape index: {}]   ;;  %s4797_s5 = inlined_call_operand.vmem [shape: f32[8,32], index: 5, kind: input, shape index: {}]   ;;  %s4798_s6 = inlined_call_operand.vmem [shape: f32[32,32], index: 6, kind: input, shape index: {}]   ;;  %s4799_s7 = inlined_call_operand.vmem [shape: f32[2,1,32], index: 7, kind: input, shape index: {}]   ;;  %s4800_s8 = inlined_call_operand.vmem [shape: f32[2,1,32], index: 8, kind: input, shape index: {}]   ;;  %s4801_s9 = inlined_call_operand.vmem [shape: bf16[2,32,96], index: 9, kind: input, shape index: {}]   ;;  %s4802_s10 = inlined_call_operand.vmem [shape: f32[2,1,96], index: 10, kind: input, shape index: {}]   ;;  %s4803_s11 = inlined_call_operand.vmem [shape: bf16[2,32,32], index: 11, kind: input, shape index: {}]   ;;  %s4804_s12 = inlined_call_operand.hbm [shape: f32[2,1,32], index: 12, kind: input, shape index: {}]   ;;  %s4805_s13 = inlined_call_operand.hbm [shape: f32[2,1,32], index: 13, kind: input, shape index: {}]   ;;  %s4806_s14 = inlined_call_operand.hbm [shape: f32[2,1,32], index: 14, kind: input, shape index: {}]   ;;  %s4807_s15 = inlined_call_operand.hbm [shape: bf16[2,32,64], index: 15, kind: input, shape index: {}]   ;;  %s4808_s16 = inlined_call_operand.hbm [shape: f32[2,1,64], index: 16, kind: input, shape index: {}]   ;;  %s4809_s17 = inlined_call_operand.vmem [shape: bf16[2,64,32], index: 17, kind: input, shape index: {}]   ;;  %s4810_s18 = inlined_call_operand.vmem [shape: f32[2,1,32], index: 18, kind: input, shape index: {}]   ;;  %s4811_s19 = inlined_call_operand.vmem [shape: f32[1,32], index: 19, kind: input, shape index: {}]   ;;  %s4812_s20 = inlined_call_operand.vmem [shape: f32[1,32], index: 20, kind: input, shape index: {}]   ;;  %s4813_s21 = inlined_call_operand.hbm [shape: f32[16,32], index: 21, kind: output, shape index: {}]  }
   0x1   :  { %4838 = sst [smem:[#allocation30_spill]] %s4792_s0 }
   0x2   :  { %4839 = sst [smem:[#allocation31_spill]] %s4793_s1 }
   0x3   :  { %4840 = sst [smem:[#allocation32_spill]] %s4794_s2 }
   0x4   :  { %4841 = sst [smem:[#allocation33_spill]] %s4795_s3 }
   0x5   :  { %4842 = sst [smem:[#allocation34_spill]] %s4796_s4 }
   0x6   :  { %4843 = sst [smem:[#allocation35_spill]] %s4797_s5 }
   0x7   :  { %4844 = sst [smem:[#allocation36_spill]] %s4804_s12 }
   0x8   :  { %4845 = sst [smem:[#allocation37_spill]] %s4813_s21 }
   0x9   :  { %26 = vsyncpa [#allocation4], 0 }
   0xa   :  { %27 = vsyncpa [#allocation7], 0 }
   0xb   :  { %28 = vsyncpa [#allocation10], 0 }
   0xc   :  { %29 = vsyncpa [#allocation13], 0 }
   0xd   :  { %30 = vsyncpa [#allocation16], 0 }
   0xe   :  { %31 = vsyncpa [#allocation5], 0 }
   0xf   :  { %33 = vsyncpa [#allocation5 + $0x1], 0  ;;  %s4258_s2 = smov 0   ;;  %s4260_s25 = smov 0  }
  0x10   :  { %s4262_s26 = smov 0   ;;  %s4264_s27 = smov 0  }
  0x11 LB: > { %4846 = sst [smem:[#allocation24_spill]] %s4103_s2  ;;  %s4279_s3 = sadd.s32 4294967295, %s4115_s27   ;;  %s4115_s27 = sphi %s4264_s27, %s4891_s27   ;;  %s4111_s26 = sphi %s4262_s26, %s4893_s26   ;;  %s4107_s25 = sphi %s4260_s25, %s4895_s25   ;;  %s4103_s2 = sphi %s4258_s2, %s4894_s2  }
  0x12   : > { %4847 = sst [smem:[#allocation25_spill]] %s4111_s26  ;;  %s3248_s28 = sadd.s32 4294967294, %s4115_s27  }
  0x13   : > { %4848 = sst [smem:[#allocation26_spill]] %s4115_s27  ;;  %s4283_s29 = sadd.s32 1, %s4115_s27  }
  0x14   : > { %4849 = sst [smem:[#allocation27_spill]] %s4283_s29  ;;  %s492_s0 = sadd.s32 1, %s4111_s26 }
  0x15   : > { %s489_s4 = ssub.s32 %s4115_s27, %s4283_s29  ;;  %p502_p0 = scmp.ne.s32.totalorder %s4111_s26, %s4107_s25 }
  0x16   : > { %p490_p1 = scmp.eq.s32.totalorder %s489_s4, 0  ;;  %p503_p2 = scmp.eq.s32.totalorder %s4279_s3, 1 }
  0x17   : > { %p508_p3 = scmp.ne.s32.totalorder %s4107_s25, %s4103_s2  ;;  %p509_p4 = scmp.eq.s32.totalorder %s3248_s28, 1 }
  0x18   : > { %s4294_s30 = scalar_select %p490_p1, %s4111_s26, %s492_s0  }
  0x19   : > { %p4296_p5 = por %p503_p2, %p502_p0  ;;  %p4300_p6 = por %p509_p4, %p508_p3 }
  0x1a   : > { %4850 = sst [smem:[#allocation28_spill]] %s4294_s30  ;;  %p3249_p7 = scmp.ge.s32.totalorder %s4115_s27, 1 }
  0x1b   : > { %s4851_s5 = scalar_select %p4296_p5, 1, 0 }
  0x1c   : > { %s4852_s22 = scalar_select %p4300_p6, 1, 0 }
  0x1d   : > { %p516_p8 = scmp.lt.s32.totalorder %s4115_s27, 3  ;;  %p4821_p9 = scmp.eq.s32.totalorder %s4279_s3, 0 }
  0x1e   : > { %4853 = sst [smem:[#allocation29_spill]] %s4852_s22  ;;  %s4117_s1 = smov [#allocation6]  }
  0x1f   : > { %p4307_p10 = pnand %p3249_p7, %p516_p8  ;;  %s543_s24 = sshll.u32 %s4117_s1, 4  ;;  %s544_s24 = int_to_ptr.vmem [resolvable:$true] %s543_s24 }
  0x20   : > { %s4118_s28 = smov [#allocation9]   ;;  %s4119_s30 = smov [#allocation12]  }
  0x21   : > { %p3649_p11 = pneg %p4307_p10  ;;  %s585_s0 = sshll.u32 %s4118_s28, 4  ;;  %s4319_s0 = int_to_ptr.vmem [resolvable:$true] %s585_s0 }
  0x22   : > { %s611_s26 = sshll.u32 %s4119_s30, 4  ;;  %s3838_s1 = scalar_lea.vmem %s544_s24, 16  ;;  %s612_s26 = int_to_ptr.vmem [resolvable:$true] %s611_s26 }
  0x23   : > { %p4315_p12 = pnand %p4821_p9, %p3649_p11  ;;  %p3839_p0 = scmp.ne.s32.totalorder %s544_s24, %s3838_s1 }
  0x24   : > { %s3845_s28 = scalar_lea.vmem %s544_s24, 32  ;;  %p3846_p3 = scmp.lt.s32.totalorder %s544_s24, %s544_s24 }
  0x25   : > { %p4323_p13 = pneg %p4315_p12  ;;  %p3847_p4 = scmp.lt.s32.totalorder %s3845_s28, %s3838_s1 }
  0x27   : > { %p3841_p1 = pnand %p3839_p0, %p4323_p13  ;;  %p3848_p7 = por %p3847_p4, %p3846_p3 }
  0x29   : > { %p3842_p2 = pneg %p3841_p1 }
  0x2b   : > { %p3849_p8 = pnand %p3848_p7, %p3842_p2 }
  0x2d   : > { %3852 = shalt.err (!%p3849_p8)
}
  0x2e   : > { %s4857_s2 = sld [smem:[#allocation33_spill]]  ;;  %s3864_s27 = scalar_lea.vmem %s4319_s0, 32 }
  0x2f   : > { %p3865_p11 = scmp.ne.s32.totalorder %s4319_s0, %s3864_s27  ;;  %p3872_p9 = scmp.lt.s32.totalorder %s4319_s0, %s4319_s0 }
  0x30   : > { %p3873_p3 = scmp.lt.s32.totalorder %s3864_s27, %s3864_s27 }
  0x31   : > { %p3867_p0 = pnand %p3865_p11, %p4323_p13 }
  0x32   : > { %p3874_p2 = por %p3873_p3, %p3872_p9 }
  0x33   : > { %p3868_p1 = pneg %p3867_p0 }
  0x34   : > { %3655 = dma.hbm_to_vmem [thread:$0]  (!%p4315_p12), %s4857_s2, 16, %s544_s24, [#allocation7]  }
  0x35   : > { %p3875_p4 = pnand %p3874_p2, %p3868_p1 }
  0x37   : > { %3878 = shalt.err (!%p3875_p4)
}
  0x38   : > { %s4824_s1 = smov 16   ;;  %s4826_s22 = smov 1  }
  0x39   : > { %s4858_s12 = sld [smem:[#allocation36_spill]]  ;;  %s3890_s28 = scalar_lea.vmem %s612_s26, 32 }
  0x3a   : > { %p3891_p7 = scmp.ne.s32.totalorder %s612_s26, %s3890_s28  ;;  %p3898_p11 = scmp.lt.s32.totalorder %s612_s26, %s612_s26 }
  0x3b   : > { %p3899_p0 = scmp.lt.s32.totalorder %s3890_s28, %s3890_s28 }
  0x3c   : > { %p3893_p9 = pnand %p3891_p7, %p4323_p13 }
  0x3d   : > { %p3900_p1 = por %p3899_p0, %p3898_p11 }
  0x3e   : > { %p3894_p8 = pneg %p3893_p9 }
  0x3f   : > { %3661 = dma.hbm_to_vmem [thread:$0]  (!%p4315_p12), %s4858_s12, 32, %s4319_s0, [#allocation10], %s4824_s1, %s4824_s1, %s4826_s22  }
  0x40   : > { %p3901_p3 = pnand %p3900_p1, %p3894_p8 }
  0x42   : > { %3904 = shalt.err (!%p3901_p3)
}
  0x43   : > { %3667 = dma.hbm_to_vmem [thread:$0]  (!%p4315_p12), %s4806_s14, 32, %s612_s26, [#allocation13], %s4824_s1, %s4824_s1, %s4826_s22  }
  0x44   : > { %s4122_s0 = smov [#allocation3]   ;;  %s4123_s24 = smov [#allocation8]  }
  0x45   : > { %s532_s2 = sshll.u32 %s4122_s0, 4  ;;  %s554_s12 = sshll.u32 %s4123_s24, 4  ;;  %s533_s2 = int_to_ptr.vmem [resolvable:$true] %s532_s2  ;;  %s555_s12 = int_to_ptr.vmem [resolvable:$true] %s554_s12 }
  0x46   : > { %s3916_s21 = scalar_lea.vmem %s533_s2, 16  ;;  %s3923_s28 = scalar_lea.vmem %s533_s2, 32 }
  0x47   : > { %p3917_p2 = scmp.ne.s32.totalorder %s533_s2, %s3916_s21  ;;  %p3924_p9 = scmp.lt.s32.totalorder %s533_s2, %s533_s2 }
  0x48   : > { %p3925_p8 = scmp.lt.s32.totalorder %s3923_s28, %s3916_s21 }
  0x49   : > { %p3919_p4 = pnand %p3917_p2, %p4323_p13 }
  0x4a   : > { %p3926_p11 = por %p3925_p8, %p3924_p9 }
  0x4b   : > { %p3920_p7 = pneg %p3919_p4 }
  0x4d   : > { %p3927_p0 = pnand %p3926_p11, %p3920_p7 }
  0x4f   : > { %3930 = shalt.err (!%p3927_p0)
}
  0x50   : > { %s4859_s30 = sld [smem:[#allocation32_spill]]  ;;  %s3942_s0 = scalar_lea.vmem %s555_s12, 16 }
  0x51   : > { %p3943_p1 = scmp.ne.s32.totalorder %s555_s12, %s3942_s0  ;;  %s3949_s24 = scalar_lea.vmem %s555_s12, 32 }
  0x52   : > { %p3950_p4 = scmp.lt.s32.totalorder %s555_s12, %s555_s12  ;;  %p3951_p6 = scmp.lt.s32.totalorder %s3949_s24, %s3942_s0 }
  0x53   : > { %p3945_p3 = pnand %p3943_p1, %p4323_p13 }
  0x54   : > { %p3952_p5 = por %p3951_p6, %p3950_p4 }
  0x55   : > { %p3946_p2 = pneg %p3945_p3 }
  0x56   : > { %3652 = dma.hbm_to_vmem [thread:$0]  (!%p4315_p12), %s4859_s30, 16, %s533_s2, [#allocation4]  }
  0x57   : > { %p3953_p9 = pnand %p3952_p5, %p3946_p2 }
  0x59   : > { %3956 = shalt.err (!%p3953_p9)
}
  0x5a   : > { %s4860_s1 = sld [smem:[#allocation34_spill]]  ;;  %s4124_s2 = smov [#allocation11]  }
  0x5b   : > { %s598_s27 = sshll.u32 %s4124_s2, 4  ;;  %s4125_s26 = smov [#allocation14]   ;;  %s599_s27 = int_to_ptr.vmem [resolvable:$true] %s598_s27 }
  0x5c   : > { %s624_s30 = sshll.u32 %s4125_s26, 4  ;;  %s3968_s22 = scalar_lea.vmem %s599_s27, 32  ;;  %s625_s30 = int_to_ptr.vmem [resolvable:$true] %s624_s30 }
  0x5d   : > { %p3969_p7 = scmp.ne.s32.totalorder %s599_s27, %s3968_s22  ;;  %p3976_p6 = scmp.lt.s32.totalorder %s599_s27, %s599_s27 }
  0x5e   : > { %p3977_p5 = scmp.lt.s32.totalorder %s3968_s22, %s3968_s22 }
  0x5f   : > { %p3971_p8 = pnand %p3969_p7, %p4323_p13 }
  0x60   : > { %3658 = dma.hbm_to_vmem [thread:$0]  (!%p4315_p12), %s4860_s1, 16, %s555_s12, [#allocation7]  }
  0x61   : > { %p3972_p11 = pneg %p3971_p8  ;;  %p3978_p0 = por %p3977_p5, %p3976_p6 }
  0x63   : > { %p3979_p1 = pnand %p3978_p0, %p3972_p11 }
  0x65   : > { %3982 = shalt.err (!%p3979_p1)
}
  0x66   : > { %s4861_s0 = smov 1   ;;  %s4862_s24 = smov 16  }
  0x67   : > { %3664 = dma.hbm_to_vmem [thread:$0]  (!%p4315_p12), %s4805_s13, 32, %s599_s27, [#allocation10], %s4862_s24, %s4862_s24, %s4861_s0  }
  0x68   : > { %s3994_s21 = scalar_lea.vmem %s625_s30, 512  ;;  %p4002_p9 = scmp.lt.s32.totalorder %s625_s30, %s625_s30 }
  0x69   : > { %p3995_p3 = scmp.ne.s32.totalorder %s625_s30, %s3994_s21  ;;  %p4003_p7 = scmp.lt.s32.totalorder %s3994_s21, %s3994_s21 }
  0x6b   : > { %p3997_p2 = pnand %p3995_p3, %p4323_p13  ;;  %p4004_p8 = por %p4003_p7, %p4002_p9 }
  0x6d   : > { %p3998_p4 = pneg %p3997_p2 }
  0x6f   : > { %p4005_p11 = pnand %p4004_p8, %p3998_p4 }
  0x71   : > { %4008 = shalt.err (!%p4005_p11)
}
  0x72   : > { %s4126_s22 = smov 64   ;;  %s4127_s28 = smov 4  }
  0x73   : > { %3670 = dma.hbm_to_vmem [thread:$0]  (!%p4315_p12), %s4807_s15, 512, %s625_s30, [#allocation13], %s4126_s22, %s4126_s22, %s4127_s28  }
  0x74   : > { %s4128_s27 = smov [#allocation15]  }
  0x75   : > { %s637_s12 = sshll.u32 %s4128_s27, 4  ;;  %s638_s12 = int_to_ptr.vmem [resolvable:$true] %s637_s12 }
  0x76   : > { %s4020_s1 = scalar_lea.vmem %s638_s12, 32  ;;  %p4028_p1 = scmp.lt.s32.totalorder %s638_s12, %s638_s12 }
  0x77   : > { %p4021_p6 = scmp.ne.s32.totalorder %s638_s12, %s4020_s1  ;;  %p4029_p3 = scmp.lt.s32.totalorder %s4020_s1, %s4020_s1 }
  0x79   : > { %p4023_p5 = pnand %p4021_p6, %p4323_p13  ;;  %p4030_p2 = por %p4029_p3, %p4028_p1 }
  0x7b   : > { %p4024_p0 = pneg %p4023_p5 }
  0x7d   : > { %p4031_p4 = pnand %p4030_p2, %p4024_p0 }
  0x7f   : > { %4034 = shalt.err (!%p4031_p4)
}
  0x80   : > { %3673 = dma.hbm_to_vmem [thread:$0]  (!%p4315_p12), %s4808_s16, 32, %s638_s12, [#allocation16], %s4862_s24, %s4862_s24, %s4861_s0  }
  0x81   : > { %672 = sbr.rel (%p4307_p10) target bundleno = 6379 (0x18eb), region = 104  ;;  %p4863_p13 = scmp.eq.s32.totalorder (!%p4307_p10), %s4279_s3, 0 }
  0x86   : > { %4078 = dma.done.wait (%p4863_p13), [#allocation4], 16   ;;  %p4864_p9 = pmov %p4863_p13 }
  0x88   : > { %4080 = vsyncadd (%p4864_p9), [#allocation4], 4294967280  ;;  %p4865_p7 = pmov %p4864_p9 }
  0x8a   : > { %4082 = dma.done.wait (%p4865_p7), [#allocation7], 32   ;;  %p4866_p8 = pmov %p4865_p7 }
  0x8b   : > { %p4867_p11 = pmov %p4865_p7 }
  0x8c   : > { %4084 = vsyncadd (%p4866_p8), [#allocation7], 4294967264 }
  0x8d   : > { %4086 = dma.done.wait (%p4867_p11), [#allocation10], 64   ;;  %p4868_p12 = pmov %p4865_p7 }
  0x8e   : > { %p4869_p10 = pmov %p4865_p7 }
  0x8f   : > { %4088 = vsyncadd (%p4868_p12), [#allocation10], 4294967232 }
  0x90   : > { %4090 = dma.done.wait (%p4869_p10), [#allocation13], 544   ;;  %p4870_p6 = pmov %p4865_p7 }
  0x92   : > { %4092 = vsyncadd (%p4870_p6), [#allocation13], 4294966752  ;;  %p4871_p5 = pmov %p4870_p6 }
  0x94   : > { %4094 = dma.done.wait (%p4871_p5), [#allocation16], 32   ;;  %p4872_p0 = pmov %p4871_p5 }
  0x95   : > { %p759_p1 = scmp.lt.s32.totalorder %s4279_s3, 1  ;;  %v4129_v0 = vmov 0   ;;  %s4873_s24 = sld [smem:[#allocation30_spill]]  ;;  %v4130_v1 = vmov 0.0   ;;  %v799_v3 = vld [vmem:[%s4798_s6 + $0x18] sm:$0xff]  ;;  %v798_v4 = vld [vmem:[%s4798_s6 + $0x10] sm:$0xff] }
  0x96   : > { %4096 = vsyncadd (%p4872_p0), [#allocation16], 4294967264  ;;  %3757 = vset.pattern.permute.xlu0 %v4129_v0  ;;  %3441 = vmatprep.subr.mxu0 %v4130_v1  ;;  %v797_v5 = vld [vmem:[%s4798_s6 + $0x8] sm:$0xff]  ;;  %v796_v6 = vld [vmem:[%s4798_s6] sm:$0xff]  ;;  %v4131_v7 = vmov 1   ;;  %vm4132_vm0 = vmmov 0  }
  0x97   : > { %s760_s29 = scalar_select %p759_p1, %s4279_s3, 1  ;;  %3471 = vmatprep.subr.mxu1 %v4130_v1  ;;  %3442 = vmatpush3.msra.mxu0 %v799_v3  ;;  %v3270_v11 = vld [vmem:[#allocation3] ss:$0 sm:$0xff]  ;;  %vm800_vm1 = vcmask 261120   ;;  %v3275_v41 = vld [vmem:[#allocation6] ss:$0 sm:$0xff] }
  0x98   : > { %3443 = vmatprep.subr.mxu0 %v4130_v1  ;;  %3449 = vmatprep.mubr.msk.f32.mxu0 %vm4132_vm0, %v4130_v1  ;;  %s4874_s4 = sld [smem:[#allocation31_spill]]  ;;  %v3276_v43 = vld [vmem:[#allocation8] ss:$0 sm:$0xff]  ;;  %v3760_v55 = vld [vmem:[%s4801_s9] sm:$0xff]   ;;  %vm1087_vm2 = vcmask 64512   ;;  %s4830_s28 = smov 64  }
  0x99   : > { %s3269_s23 = sshll.u32 %s760_s29, 3  ;;  %3444 = vmatpush3.msra.mxu0 %v798_v4  ;;  %3473 = vmatprep.mubr.msk.f32.mxu1 %vm4132_vm0, %v4130_v1  ;;  %s4875_s2 = sld [smem:[#allocation35_spill]]  ;;  %v3759_v54 = vld [vmem:[%s4801_s9 + $0x8] sm:$0xff]   ;;  %v3277_v60 = vld [vmem:[%s4799_s7] ss:$0 sm:$0xff]  ;;  %vm1420_vm3 = vcmask 130112  }
  0x9a   : > { %3445 = vmatprep.subr.mxu0 %v4130_v1  ;;  %v3278_v62 = vld [vmem:[%s4800_s8] ss:$0 sm:$0xff]  ;;  %s4836_s26 = smov 80   ;;  %s4137_s27 = smov 112   ;;  %vm1591_vm4 = vcmask 195712   ;;  %vm1762_vm5 = vcmask 261312  }
  0x9b   : > { %s762_s22 = scalar_lea.vmem %s4873_s24, %s3269_s23  ;;  %3446 = vmatpush3.msra.mxu0 %v797_v5  ;;  %s4835_s12 = smov 72   ;;  %vm1978_vm6 = vcmask 523264  }
  0x9c   : > { %v764_v2 = vld [vmem:[%s762_s22] sm:$0xff]  ;;  %3447 = vmatprep.subr.mxu0 %v4130_v1  ;;  %s4133_s22 = smov 96   ;;  %s4139_s1 = smov 88  }
  0x9d   : > { %776 = vperm.xlu0 %3757, %v764_v2   ;;  %3448 = vmatpush3.msra.mxu0 %v796_v6  ;;  %s4140_s21 = smov 104   ;;  %s4831_s30 = smov 56  }
  0x9e   : > { %3452 = vmatprep.subr.mxu0 %v4130_v1  ;;  %v3271_v8 = vld [vmem:[%s4874_s4] ss:$0 sm:$0xff]  ;;  %v3272_v12 = vld [vmem:[%s4874_s4 + $0x1] ss:$0 sm:$0xff]  ;;  %s4828_s29 = smov 40   ;;  %s4829_s23 = smov 48  }
  0x9f   : > { %v984_v45 = vld [vmem:[%s4875_s2] sm:$0xff]  ;;  %s4135_s2 = smov 120   ;;  %s4832_s0 = smov 24  }
  0xa0   : > { %s4885_s24 = sld [smem:[#allocation37_spill]]  ;;  %p4886_p2 = scmp.ne.s32.totalorder %s4851_s5, 0 }
  0xa1   : > { %3758 = vset.pattern.permute.xlu0 %v4131_v7 }
  0xa2   : > { %787 = vperm.xlu0 %3758, %v764_v2  }
 0x118   : > { %v777_v9 = vpop.permute.xlu0 %776 }
 0x119   : > { %v783_v10 = vmul.f32 %v3271_v8, %v777_v9 }
 0x11b   : > { %v784_v14 = vadd.f32 %v3270_v11, %v783_v10 }
 0x11d   : > { %v788_v13 = vpop.permute.xlu0 %787 }
 0x11e   : > { %v794_v15 = vmul.f32 %v3272_v12, %v788_v13 }
 0x120   : > { %v795_v16 = vadd.f32 %v794_v15, %v784_v14 }
 0x122   : > { %3450 = vmatmul.mubr.msk.f32.vlgmr.msra.gmra.mxu0 %vm800_vm1, %v795_v16 }
 0x123   : > { %3453 = vmatpush3.msra.mxu0 %v799_v3  ;;  %3460 = vmatprep.mubr.msk.f32.mxu0 %vm4132_vm0, %v4130_v1  ;;  %v3279_v3 = vld [vmem:[%s4802_s10] ss:$0 sm:$0xff] }
 0x124   : > { %3454 = vmatprep.subr.mxu0 %v4130_v1 }
 0x125   : > { %3455 = vmatpush3.msra.mxu0 %v798_v4 }
 0x126   : > { %3456 = vmatprep.subr.mxu0 %v4130_v1 }
 0x127   : > { %3457 = vmatpush3.msra.mxu0 %v797_v5 }
 0x128   : > { %3458 = vmatprep.subr.mxu0 %v4130_v1 }
 0x129   : > { %3459 = vmatpush3.msra.mxu0 %v796_v6 }
 0x12a   : > { %3463 = vmatprep.subr.bf16.mxu0 %v4130_v1 }
 0x1e2   : > { %v870_v17 = vpop.f32.mrf.mxu0 }
 0x1e3   : > { %v874_v18 = vsel %vm800_vm1, %v870_v17, 0.0 }
 0x1e4   : > { %v875_v19 = vrot.slane %v874_v18, 4  ;;  %v3451_v20 = vpop.f32.mrf.mxu0 }
 0x1e6   : > { %v876_v21 = vadd.f32 %v875_v19, %v874_v18 }
 0x1e8   : > { %v877_v22 = vrot.slane %v876_v21, 2 }
 0x1ea   : > { %v878_v23 = vadd.f32 %v877_v22, %v876_v21 }
 0x1ec   : > { %v879_v24 = vrot.slane %v878_v23, 1 }
 0x1ee   : > { %v880_v25 = vadd.f32 %v879_v24, %v878_v23 }
 0x1f0   : > { %v881_v26 = vmul.f32 0.015625, %v880_v25 }
 0x1f2   : > { %v882_v27 = vsub.f32 %v795_v16, %v881_v26 }
 0x1f4   : > { %v883_v28 = vmul.f32 %v882_v27, %v882_v27 }
 0x1f6   : > { %3461 = vmatmul.mubr.msk.f32.vlgmr.msra.gmra.mxu0 %vm800_vm1, %v883_v28 }
 0x1f7   : > { %3467 = vmatprep.mubr.msk.bf16.mxu0 %vm4132_vm0, %v4130_v1  ;;  %3464 = vmatpush3.bf16.msra.mxu0 %v3759_v54 }
 0x1f8   : > { %3465 = vmatprep.subr.bf16.mxu0 %v4130_v1 }
 0x1fb   : > { %3466 = vmatpush3.bf16.msra.mxu0 %v3760_v55 }
 0x1fc   : > { %3486 = vmatprep.subr.mxu0 %v4130_v1 }
 0x2b6   : > { %v953_v29 = vpop.f32.mrf.mxu0 }
 0x2b7   : > { %v957_v30 = vsel %vm800_vm1, %v953_v29, 0.0 }
 0x2b8   : > { %v958_v31 = vrot.slane %v957_v30, 4  ;;  %v3462_v32 = vpop.f32.mrf.mxu0 }
 0x2ba   : > { %v959_v33 = vadd.f32 %v958_v31, %v957_v30 }
 0x2bc   : > { %v960_v34 = vrot.slane %v959_v33, 2 }
 0x2be   : > { %v961_v35 = vadd.f32 %v960_v34, %v959_v33 }
 0x2c0   : > { %v962_v36 = vrot.slane %v961_v35, 1 }
 0x2c2   : > { %v963_v37 = vadd.f32 %v962_v36, %v961_v35 }
 0x2c4   : > { %v964_v38 = vmul.f32 0.015625, %v963_v37 }
 0x2c6   : > { %v965_v39 = vadd.f32 1e-05, %v964_v38 }
 0x2c8   : > { %3779 = vrsqrt.f32 %v965_v39 }
 0x2d5   : > { %v3780_v40 = vpop.eup %3779 }
 0x2d6   : > { %v967_v42 = vmul.f32 %v3780_v40, %v882_v27 }
 0x2d8   : > { %v975_v44 = vmul.f32 %v3275_v41, %v967_v42 }
 0x2da   : > { %v983_v46 = vadd.f32 %v3276_v43, %v975_v44 }
 0x2dc   : > { %v4470_v47 = vadd.f32 %v984_v45, %v983_v46 }
 0x2de   : > { %v988_v48 = vsel %vm800_vm1, %v4470_v47, 0.0 }
 0x2df   : > { %989 = vadd.xlane.f32.xlu1 %v988_v48 }
 0x368   : > { %v990_v49 = vpop.xlane.xlu1 %989 }
 0x369   : > { %v992_v50 = vmul.f32 0.03125, %v990_v49 }
 0x36b   : > { %v993_v51 = vsub.f32 %v4470_v47, %v992_v50 }
 0x36d   : > { %v994_v52 = vmul.f32 %v993_v51, %v993_v51 }
 0x36f   : > { %v995_v53 = vsel %vm800_vm1, %v994_v52, 0.0 }
 0x370   : > { %996 = vadd.xlane.f32.xlu1 %v995_v53 }
 0x3f9   : > { %v997_v56 = vpop.xlane.xlu1 %996 }
 0x3fa   : > { %v998_v57 = vmul.f32 0.03125, %v997_v56 }
 0x3fc   : > { %v999_v58 = vadd.f32 1e-05, %v998_v57 }
 0x3fe   : > { %3781 = vrsqrt.f32 %v999_v58 }
 0x40b   : > { %v3782_v59 = vpop.eup %3781 }
 0x40c   : > { %v1001_v61 = vmul.f32 %v3782_v59, %v993_v51 }
 0x40e   : > { %v1008_v63 = vmul.f32 %v3277_v60, %v1001_v61 }
 0x410   : > { %v1015_v0 = vadd.f32 %v3278_v62, %v1008_v63 }
 0x412   : > { %v1016_v2 = vpack.c.bf16 %v1015_v0, %v1015_v0 }
 0x414   : > { %3468 = vmatmul.mubr.msk.bf16.vlgmr.msra.gmra.mxu0 %vm800_vm1, %v1016_v2 }
 0x415   : > { %3488 = vmatprep.mubr.msk.f32.mxu0 %vm4132_vm0, %v4130_v1 }
 0x4d4   : > { %v1077_v4 = vpop.f32.mrf.mxu0 }
 0x4d5   : > { %v4496_v5 = vadd.f32 %v3279_v3, %v1077_v4 }
 0x4d6   : > { %v3469_v6 = vpop.f32.mrf.mxu0 }
 0x4d7   : > { %1085 = vrot.lane.b32.xlu1 %v4496_v5, %s4133_s22  ;;  %v1083_v10 = vmul.f32 0.35355338, %v4496_v5  ;;  %v3762_v6 = vld [vmem:[%s4803_s11] sm:$0xff]  }
 0x4d8   : > { %v1080_v7 = vpop.f32.mrf.mxu0 }
 0x4da   : > { %v3470_v8 = vpop.f32.mrf.mxu0 }
 0x549   : > { %v1086_v9 = vpop.permute.xlu1 %1085 }
 0x54a   : > { %3472 = vmatpush3.xpose.msk.msra.mxu1 %vm1087_vm2, %v1086_v9 }
 0x54b   : > { %3476 = vmatprep.subr.mxu1 %v4130_v1 }
 0x54d   : > { %3474 = vmatmul.mubr.msk.f32.vlgmr.msra.gmra.mxu1 %vm1087_vm2, %v1083_v10 }
 0x54e   : > { %3478 = vmatprep.mubr.msk.f32.mxu1 %vm4132_vm0, %v4130_v1 }
 0x60d   : > { %v1159_v11 = vpop.f32.mrf.mxu1 }
 0x60e   : > { %v1163_v12 = vsel %vm1087_vm2, %v1159_v11, -inf }
 0x60f   : > { %1164 = vmax.xlane.f32.xlu0 %v1163_v12  ;;  %v3475_v13 = vpop.f32.mrf.mxu1 }
 0x625   : > { %1174 = vrot.lane.b32.xlu0 %v4496_v5, %s4830_s28  ;;  %s4834_s28 = smov 8  }
 0x629   : > { %1251 = vrot.lane.b32.xlu0 %v1083_v10, %s4135_s2 }
 0x62d   : > { %1424 = vrot.lane.b32.xlu0 %v4496_v5, %s4836_s26  ;;  %s756_s26 = sand.u32 1, %s4107_s25  }
 0x62e   : > { %s3097_s4 = scalar_lea.sflag [#allocation5], %s756_s26 }
 0x631   : > { %1422 = vrot.lane.b32.xlu0 %v1083_v10, %s4137_s27 }
 0x635   : > { %1595 = vrot.lane.b32.xlu0 %v4496_v5, %s4835_s12  ;;  %s4883_s12 = smov 16  }
 0x698   : > { %v1165_v14 = vpop.xlane.xlu0 %1164 }
 0x699   : > { %v1166_v15 = vsub.f32 %v1159_v11, %v1165_v14 }
 0x69b   : > { %v1167_v16 = vmul.f32 1.442695, %v1166_v15 }
 0x69c   : > { %v1175_v17 = vpop.permute.xlu0 %1174 }
 0x69d   : > { %3783 = vpow2.f32 %v1167_v16  ;;  %3477 = vmatpush3.msra.mxu1 %v1175_v17 }
 0x69e   : > { %3481 = vmatprep.subr.mxu1 %v4130_v1 }
 0x6a0   : > { %v1252_v21 = vpop.permute.xlu0 %1251 }
 0x6a4   : > { %v1425_v22 = vpop.permute.xlu0 %1424 }
 0x6a8   : > { %v1423_v26 = vpop.permute.xlu0 %1422 }
 0x6aa   : > { %v3784_v18 = vpop.eup %3783 }
 0x6ab   : > { %v1169_v19 = vsel %vm1087_vm2, %v3784_v18, 0.0 }
 0x6ac   : > { %1170 = vadd.xlane.f32.xlu1 %v1169_v19  ;;  %v1596_v27 = vpop.permute.xlu0 %1595 }
 0x6bd   : > { %1253 = vrot.lane.b32.xlu1 %v4496_v5, %s4139_s1 }
 0x6c1   : > { %1593 = vrot.lane.b32.xlu1 %v1083_v10, %s4140_s21 }
 0x735   : > { %v1171_v20 = vpop.xlane.xlu1 %1170 }
 0x736   : > { %3785 = vrcp.f32 %v1171_v20 }
 0x739   : > { %v1254_v25 = vpop.permute.xlu1 %1253 }
 0x73d   : > { %v1594_v28 = vpop.permute.xlu1 %1593 }
 0x743   : > { %v3786_v23 = vpop.eup %3785 }
 0x744   : > { %v1173_v24 = vmul.f32 %v3786_v23, %v3784_v18  ;;  %v3295_v18 = vld [vmem:[#allocation9] ss:$0 sm:$0xff] }
 0x746   : > { %3479 = vmatmul.mubr.msk.f32.vlgmr.msra.gmra.mxu1 %vm1087_vm2, %v1173_v24 }
 0x747   : > { %3482 = vmatpush3.xpose.msk.msra.mxu1 %vm1087_vm2, %v1254_v25  ;;  %3483 = vmatprep.mubr.msk.f32.mxu1 %vm4132_vm0, %v4130_v1 }
 0x748   : > { %3491 = vmatprep.subr.mxu1 %v4130_v1 }
 0x74a   : > { %3484 = vmatmul.mubr.msk.f32.vlgmr.msra.gmra.mxu1 %vm1087_vm2, %v1252_v21 }
 0x74b   : > { %3492 = vmatpush3.xpose.msk.msra.mxu1 %vm1087_vm2, %v1425_v22  ;;  %3493 = vmatprep.mubr.msk.f32.mxu1 %vm4132_vm0, %v4130_v1 }
 0x74c   : > { %3501 = vmatprep.subr.mxu1 %v4130_v1 }
 0x74e   : > { %3494 = vmatmul.mubr.msk.f32.vlgmr.msra.gmra.mxu1 %vm1087_vm2, %v1423_v26 }
 0x74f   : > { %3502 = vmatpush3.xpose.msk.msra.mxu1 %vm1087_vm2, %v1596_v27  ;;  %3503 = vmatprep.mubr.msk.f32.mxu1 %vm4132_vm0, %v4130_v1 }
 0x750   : > { %3511 = vmatprep.subr.bf16.mxu1 %v4130_v1 }
 0x752   : > { %3504 = vmatmul.mubr.msk.f32.vlgmr.msra.gmra.mxu1 %vm1087_vm2, %v1594_v28 }
 0x753   : > { %3515 = vmatprep.mubr.msk.bf16.mxu1 %vm4132_vm0, %v4130_v1 }
 0x806   : > { %v1246_v29 = vpop.f32.mrf.mxu1 }
 0x807   : > { %1250 = vst.msk [vmem:[#allocation2] sm:$0xff] %vm1087_vm2, %v1246_v29 }
 0x808   : > { %v3480_v30 = vpop.f32.mrf.mxu1 }
 0x80a   : > { %v1325_v31 = vpop.f32.mrf.mxu1 }
 0x80b   : > { %v1329_v32 = vsel %vm1087_vm2, %v1325_v31, -inf }
 0x80c   : > { %1330 = vmax.xlane.f32.xlu0 %v1329_v32  ;;  %v3485_v33 = vpop.f32.mrf.mxu1  ;;  %v3764_v32 = vld [vmem:[#allocation14] sm:$0xff]  }
 0x80e   : > { %v1496_v34 = vpop.f32.mrf.mxu1 }
 0x80f   : > { %v1500_v35 = vsel %vm1087_vm2, %v1496_v34, -inf }
 0x810   : > { %1501 = vmax.xlane.f32.xlu1 %v1500_v35  ;;  %v3495_v36 = vpop.f32.mrf.mxu1 }
 0x811   : > { %v3299_v36 = vld [vmem:[#allocation11] ss:$0 sm:$0xff] }
 0x812   : > { %v1667_v37 = vpop.f32.mrf.mxu1 }
 0x813   : > { %v1671_v38 = vsel %vm1087_vm2, %v1667_v37, -inf }
 0x814   : > { %1672 = vmax.xlane.f32.xlu0 %v1671_v38  ;;  %v3505_v39 = vpop.f32.mrf.mxu1  ;;  %v3300_v38 = vld [vmem:[#allocation12] ss:$0 sm:$0xff] }
 0x821   : > { %1340 = vrot.lane.b32.xlu1 %v4496_v5, %s4831_s30  ;;  %s4833_s30 = smov 16  }
 0x895   : > { %v1331_v40 = vpop.xlane.xlu0 %1330 }
 0x896   : > { %v1332_v41 = vsub.f32 %v1325_v31, %v1331_v40  ;;  %v3763_v31 = vld [vmem:[#allocation14 + $0x8] sm:$0xff]  }
 0x898   : > { %v1333_v42 = vmul.f32 1.442695, %v1332_v41 }
 0x899   : > { %v1502_v43 = vpop.xlane.xlu1 %1501 }
 0x89a   : > { %3787 = vpow2.f32 %v1333_v42  ;;  %v1503_v44 = vsub.f32 %v1496_v34, %v1502_v43  ;;  %v3765_v42 = vld [vmem:[%s4809_s17 + $0x18] sm:$0xff]   ;;  %v3766_v43 = vld [vmem:[%s4809_s17 + $0x10] sm:$0xff]  }
 0x89c   : > { %v1504_v45 = vmul.f32 1.442695, %v1503_v44  ;;  %v3767_v44 = vld [vmem:[%s4809_s17 + $0x8] sm:$0xff]  }
 0x89d   : > { %v1341_v46 = vpop.permute.xlu1 %1340  ;;  %v1673_v48 = vpop.xlane.xlu0 %1672 }
 0x89e   : > { %3789 = vpow2.f32 %v1504_v45  ;;  %v1674_v49 = vsub.f32 %v1667_v37, %v1673_v48  ;;  %3487 = vmatpush3.msra.mxu0 %v1341_v46  ;;  %v3768_v45 = vld [vmem:[%s4809_s17] sm:$0xff]   ;;  %v3301_v46 = vld [vmem:[#allocation15] ss:$0 sm:$0xff] }
 0x89f   : > { %3496 = vmatprep.subr.mxu0 %v4130_v1 }
 0x8a0   : > { %v1675_v50 = vmul.f32 1.442695, %v1674_v49 }
 0x8a2   : > { %3791 = vpow2.f32 %v1675_v50 }
 0x8a7   : > { %v3788_v51 = vpop.eup %3787 }
 0x8a8   : > { %v1335_v52 = vsel %vm1087_vm2, %v3788_v51, 0.0 }
 0x8a9   : > { %1336 = vadd.xlane.f32.xlu0 %v1335_v52 }
 0x8ab   : > { %v3790_v53 = vpop.eup %3789 }
 0x8ac   : > { %v1506_v54 = vsel %vm1087_vm2, %v3790_v53, 0.0 }
 0x8ad   : > { %1507 = vadd.xlane.f32.xlu1 %v1506_v54 }
 0x8af   : > { %v3792_v55 = vpop.eup %3791 }
 0x8b0   : > { %v1677_v56 = vsel %vm1087_vm2, %v3792_v55, 0.0 }
 0x8b1   : > { %1678 = vadd.xlane.f32.xlu0 %v1677_v56 }
 0x8be   : > { %1682 = vrot.lane.b32.xlu1 %v4496_v5, %s4828_s29  ;;  %s4877_s29 = smov 72  }
 0x8c7   : > { %1511 = vrot.lane.b32.xlu0 %v4496_v5, %s4829_s23  ;;  %v3761_v5 = vld [vmem:[%s4803_s11 + $0x8] sm:$0xff]  }
 0x8c8   : > { %3512 = vmatpush3.bf16.msra.mxu1 %v3761_v5 }
 0x8c9   : > { %3513 = vmatprep.subr.bf16.mxu1 %v4130_v1 }
 0x8cc   : > { %3514 = vmatpush3.bf16.msra.mxu1 %v3762_v6 }
 0x8cd   : > { %3527 = vmatprep.subr.bf16.mxu1 %v4130_v1 }
 0x932   : > { %v1337_v57 = vpop.xlane.xlu0 %1336 }
 0x933   : > { %3793 = vrcp.f32 %v1337_v57 }
 0x936   : > { %v1508_v58 = vpop.xlane.xlu1 %1507 }
 0x937   : > { %3795 = vrcp.f32 %v1508_v58 }
 0x93a   : > { %v1679_v59 = vpop.xlane.xlu0 %1678  ;;  %v1683_v2 = vpop.permute.xlu1 %1682 }
 0x93b   : > { %3797 = vrcp.f32 %v1679_v59 }
 0x93e   : > { %v1512_v62 = vpop.permute.xlu0 %1511 }
 0x940   : > { %v3794_v60 = vpop.eup %3793 }
 0x941   : > { %v1339_v61 = vmul.f32 %v3794_v60, %v3788_v51 }
 0x943   : > { %3489 = vmatmul.mubr.msk.f32.vlgmr.msra.gmra.mxu0 %vm1087_vm2, %v1339_v61 }
 0x944   : > { %v3796_v63 = vpop.eup %3795  ;;  %3497 = vmatpush3.msra.mxu0 %v1512_v62  ;;  %3498 = vmatprep.mubr.msk.f32.mxu0 %vm4132_vm0, %v4130_v1 }
 0x945   : > { %3506 = vmatprep.subr.mxu0 %v4130_v1  ;;  %v1510_v0 = vmul.f32 %v3796_v63, %v3790_v53  ;;  %v3305_v63 = vld [vmem:[%s4810_s18] ss:$0 sm:$0xff] }
 0x947   : > { %3499 = vmatmul.mubr.msk.f32.vlgmr.msra.gmra.mxu0 %vm1087_vm2, %v1510_v0 }
 0x948   : > { %v3798_v3 = vpop.eup %3797  ;;  %3507 = vmatpush3.msra.mxu0 %v1683_v2  ;;  %3508 = vmatprep.mubr.msk.f32.mxu0 %vm4132_vm0, %v4130_v1 }
 0x949   : > { %v1681_v4 = vmul.f32 %v3798_v3, %v3792_v55  ;;  %3519 = vmatprep.subr.bf16.mxu0 %v4130_v1 }
 0x94b   : > { %3509 = vmatmul.mubr.msk.f32.vlgmr.msra.gmra.mxu0 %vm1087_vm2, %v1681_v4 }
 0x94c   : > { %3523 = vmatprep.mubr.msk.bf16.mxu0 %vm4132_vm0, %v4130_v1  ;;  %3520 = vmatpush3.bf16.msra.mxu0 %v3763_v31 }
 0x94d   : > { %3521 = vmatprep.subr.bf16.mxu0 %v4130_v1 }
 0x950   : > { %3522 = vmatpush3.bf16.msra.mxu0 %v3764_v32 }
 0x951   : > { %3539 = vmatprep.subr.bf16.mxu0 %v4130_v1 }
 0xa03   : > { %v1412_v7 = vpop.f32.mrf.mxu0 }
 0xa04   : > { %1417 = vrot.lane.b32.xlu1 %v1412_v7, %s4834_s28 }
 0xa05   : > { %v3490_v8 = vpop.f32.mrf.mxu0 }
 0xa07   : > { %v1583_v9 = vpop.f32.mrf.mxu0 }
 0xa08   : > { %1588 = vrot.lane.b32.xlu0 %v1583_v9, %s4833_s30  ;;  %s4884_s30 = smov 24  }
 0xa09   : > { %v3500_v10 = vpop.f32.mrf.mxu0 }
 0xa0b   : > { %v1754_v11 = vpop.f32.mrf.mxu0 }
 0xa0c   : > { %1759 = vrot.lane.b32.xlu1 %v1754_v11, %s4832_s0  ;;  %s4876_s0 = smov 80  }
 0xa0d   : > { %v3510_v12 = vpop.f32.mrf.mxu0 }
 0xa76   : > { %v1418_v13 = vpop.permute.xlu1 %1417 }
 0xa77   : > { %1421 = vst.msk [vmem:[#allocation2] sm:$0xff] %vm1420_vm3, %v1418_v13  ;;  %v3769_v13 = vld [vmem:[%s4801_s9 + $0x18] sm:$0xff]  }
 0xa7a   : > { %v1589_v14 = vpop.permute.xlu0 %1588 }
 0xa7b   : > { %1592 = vst.msk [vmem:[#allocation2] sm:$0xff] %vm1591_vm4, %v1589_v14  ;;  %v3770_v14 = vld [vmem:[%s4801_s9 + $0x10] sm:$0xff]  }
 0xa7e   : > { %v1760_v15 = vpop.permute.xlu1 %1759 }
 0xa7f   : > { %1763 = vst.msk [vmem:[#allocation2] sm:$0xff] %vm1762_vm5, %v1760_v15 }
 0xa86   : > { %v1764_v16 = vld [vmem:[#allocation2] sm:$0xff] }
 0xa87   : > { %v1765_v17 = vpack.c.bf16 %v1764_v16, %v1764_v16 }
 0xa89   : > { %3516 = vmatmul.mubr.msk.bf16.vlgmr.msra.gmra.mxu1 %vm800_vm1, %v1765_v17 }
 0xa8a   : > { %3535 = vmatprep.mubr.msk.bf16.mxu1 %vm4132_vm0, %v4130_v1  ;;  %3528 = vmatpush3.bf16.msra.mxu1 %v3765_v42 }
 0xa8b   : > { %3529 = vmatprep.subr.bf16.mxu1 %v4130_v1 }
 0xa8e   : > { %3530 = vmatpush3.bf16.msra.mxu1 %v3766_v43 }
 0xa8f   : > { %3531 = vmatprep.subr.bf16.mxu1 %v4130_v1 }
 0xa92   : > { %3532 = vmatpush3.bf16.msra.mxu1 %v3767_v44 }
 0xa93   : > { %3533 = vmatprep.subr.bf16.mxu1 %v4130_v1 }
 0xa96   : > { %3534 = vmatpush3.bf16.msra.mxu1 %v3768_v45 }
 0xa97   : > { %3557 = vmatprep.subr.mxu1 %v4130_v1 }
 0xb49   : > { %v1826_v19 = vpop.f32.mrf.mxu1 }
 0xb4a   : > { %v1827_v20 = vadd.f32 %v3295_v18, %v1826_v19  ;;  %v3313_v19 = vld [vmem:[%s4799_s7 + $0x1] ss:$0 sm:$0xff] }
 0xb4b   : > { %v3517_v21 = vpop.f32.mrf.mxu1 }
 0xb4c   : > { %v4581_v22 = vadd.f32 %v1827_v20, %v4470_v47  ;;  %v3314_v21 = vld [vmem:[%s4800_s8 + $0x1] ss:$0 sm:$0xff] }
 0xb4d   : > { %v1829_v23 = vpop.f32.mrf.mxu1 }
 0xb4e   : > { %v1835_v24 = vsel %vm800_vm1, %v4581_v22, 0.0 }
 0xb4f   : > { %1836 = vadd.xlane.f32.xlu0 %v1835_v24  ;;  %v3518_v25 = vpop.f32.mrf.mxu1 }
 0xb50   : > { %v3320_v25 = vld [vmem:[%s4802_s10 + $0x1] ss:$0 sm:$0xff] }
 0xbd8   : > { %v1837_v26 = vpop.xlane.xlu0 %1836 }
 0xbd9   : > { %v1838_v27 = vmul.f32 0.03125, %v1837_v26 }
 0xbdb   : > { %v1839_v28 = vsub.f32 %v4581_v22, %v1838_v27 }
 0xbdd   : > { %v1840_v29 = vmul.f32 %v1839_v28, %v1839_v28 }
 0xbdf   : > { %v1841_v30 = vsel %vm800_vm1, %v1840_v29, 0.0 }
 0xbe0   : > { %1842 = vadd.xlane.f32.xlu1 %v1841_v30 }
 0xc69   : > { %v1843_v47 = vpop.xlane.xlu1 %1842 }
 0xc6a   : > { %v1844_v33 = vmul.f32 0.03125, %v1843_v47 }
 0xc6c   : > { %v1845_v34 = vadd.f32 1e-05, %v1844_v33 }
 0xc6e   : > { %3799 = vrsqrt.f32 %v1845_v34 }
 0xc7b   : > { %v3800_v35 = vpop.eup %3799 }
 0xc7c   : > { %v1847_v37 = vmul.f32 %v3800_v35, %v1839_v28 }
 0xc7e   : > { %v1854_v39 = vmul.f32 %v3299_v36, %v1847_v37 }
 0xc80   : > { %v1861_v40 = vadd.f32 %v3300_v38, %v1854_v39 }
 0xc82   : > { %v1862_v41 = vpack.c.bf16 %v1861_v40, %v1861_v40 }
 0xc84   : > { %3524 = vmatmul.mubr.msk.bf16.vlgmr.msra.gmra.mxu0 %vm800_vm1, %v1862_v41 }
 0xc85   : > { %3543 = vmatprep.mubr.msk.bf16.mxu0 %vm4132_vm0, %v4130_v1  ;;  %3540 = vmatpush3.bf16.msra.mxu0 %v3769_v13 }
 0xc86   : > { %3541 = vmatprep.subr.bf16.mxu0 %v4130_v1 }
 0xc89   : > { %3542 = vmatpush3.bf16.msra.mxu0 %v3770_v14 }
 0xc8a   : > { %3547 = vmatprep.subr.mxu0 %v4130_v1 }
 0xd44   : > { %v1923_v48 = vpop.f32.mrf.mxu0 }
 0xd45   : > { %v1924_v49 = vadd.f32 %v3301_v46, %v1923_v48 }
 0xd46   : > { %v3525_v50 = vpop.f32.mrf.mxu0 }
 0xd47   : > { %v1930_v51 = vmul.f32 0.044715, %v1924_v49  ;;  %v1929_v59 = vmul.f32 0.5, %v1924_v49 }
 0xd48   : > { %v1926_v52 = vpop.f32.mrf.mxu0 }
 0xd49   : > { %v1931_v53 = vmul.f32 %v1930_v51, %v1924_v49 }
 0xd4a   : > { %v3526_v54 = vpop.f32.mrf.mxu0 }
 0xd4b   : > { %v1932_v55 = vmul.f32 %v1931_v53, %v1924_v49 }
 0xd4d   : > { %v1933_v56 = vadd.f32 %v1932_v55, %v1924_v49 }
 0xd4f   : > { %v1934_v57 = vmul.f32 0.7978846, %v1933_v56 }
 0xd51   : > { %3801 = vtanh.f32 %v1934_v57 }
 0xd5e   : > { %v3802_v58 = vpop.eup %3801 }
 0xd5f   : > { %v1936_v60 = vadd.f32 1.0, %v3802_v58 }
 0xd61   : > { %v1937_v61 = vmul.f32 %v1936_v60, %v1929_v59 }
 0xd63   : > { %v1938_v62 = vpack.c.bf16 %v1937_v61, %v1937_v61 }
 0xd65   : > { %3536 = vmatmul.mubr.msk.bf16.vlgmr.msra.gmra.mxu1 %vm1978_vm6, %v1938_v62 }
 0xd66   : > { %3559 = vmatprep.mubr.msk.f32.mxu1 %vm4132_vm0, %v4130_v1 }
 0xe25   : > { %v2016_v0 = vpop.f32.mrf.mxu1 }
 0xe26   : > { %v2017_v2 = vadd.f32 %v3305_v63, %v2016_v0 }
 0xe27   : > { %v3537_v3 = vpop.f32.mrf.mxu1 }
 0xe28   : > { %v4615_v4 = vadd.f32 %v2017_v2, %v4581_v22 }
 0xe29   : > { %v2019_v5 = vpop.f32.mrf.mxu1 }
 0xe2a   : > { %v2027_v6 = vsel %vm800_vm1, %v4615_v4, 0.0 }
 0xe2b   : > { %2028 = vadd.xlane.f32.xlu0 %v2027_v6  ;;  %v3538_v7 = vpop.f32.mrf.mxu1 }
 0xeb4   : > { %v2029_v8 = vpop.xlane.xlu0 %2028 }
 0xeb5   : > { %v2030_v9 = vmul.f32 0.03125, %v2029_v8 }
 0xeb7   : > { %v2031_v10 = vsub.f32 %v4615_v4, %v2030_v9 }
 0xeb9   : > { %v2032_v11 = vmul.f32 %v2031_v10, %v2031_v10 }
 0xebb   : > { %v2033_v12 = vsel %vm800_vm1, %v2032_v11, 0.0 }
 0xebc   : > { %2034 = vadd.xlane.f32.xlu0 %v2033_v12 }
 0xf45   : > { %v2035_v15 = vpop.xlane.xlu0 %2034 }
 0xf46   : > { %v2036_v16 = vmul.f32 0.03125, %v2035_v15 }
 0xf48   : > { %v2037_v17 = vadd.f32 1e-05, %v2036_v16 }
 0xf4a   : > { %3803 = vrsqrt.f32 %v2037_v17 }
 0xf57   : > { %v3804_v18 = vpop.eup %3803 }
 0xf58   : > { %v2039_v20 = vmul.f32 %v3804_v18, %v2031_v10 }
 0xf5a   : > { %v2046_v22 = vmul.f32 %v3313_v19, %v2039_v20 }
 0xf5c   : > { %v2053_v23 = vadd.f32 %v3314_v21, %v2046_v22 }
 0xf5e   : > { %v2054_v24 = vpack.c.bf16 %v2053_v23, %v2053_v23 }
 0xf60   : > { %3544 = vmatmul.mubr.msk.bf16.vlgmr.msra.gmra.mxu0 %vm800_vm1, %v2054_v24 }
 0xf61   : > { %3549 = vmatprep.mubr.msk.f32.mxu0 %vm4132_vm0, %v4130_v1 }
0x1020   : > { %v2117_v26 = vpop.f32.mrf.mxu0 }
0x1021   : > { %v4641_v27 = vadd.f32 %v3320_v25, %v2117_v26 }
0x1022   : > { %v3545_v28 = vpop.f32.mrf.mxu0 }
0x1023   : > { %2292 = vrot.lane.b32.xlu0 %v4641_v27, %s4139_s1  ;;  %2125 = vrot.lane.b32.xlu1 %v4641_v27, %s4133_s22  ;;  %v2123_v30 = vmul.f32 0.35355338, %v4641_v27  ;;  %s4878_s22 = smov 56   ;;  %s4881_s1 = smov 40  }
0x1024   : > { %v2120_v29 = vpop.f32.mrf.mxu0 }
0x1025   : > { %v3771_v29 = vld [vmem:[%s4803_s11 + $0x18] sm:$0xff]  }
0x1026   : > { %v3546_v31 = vpop.f32.mrf.mxu0 }
0x1027   : > { %2460 = vrot.lane.b32.xlu0 %v2123_v30, %s4137_s27  ;;  %2290 = vrot.lane.b32.xlu1 %v2123_v30, %s4135_s2  ;;  %s4879_s2 = smov 64   ;;  %s4880_s27 = smov 48  }
0x102b   : > { %2630 = vrot.lane.b32.xlu0 %v2123_v30, %s4140_s21  ;;  %2462 = vrot.lane.b32.xlu1 %v4641_v27, %s4876_s0  ;;  %s4882_s21 = smov 8   ;;  %s4147_s0 = smov [#allocation17]  }
0x102f   : > { %2632 = vrot.lane.b32.xlu1 %v4641_v27, %s4877_s29  ;;  %s4039_s29 = sshll.u32 %s4147_s0, 4  ;;  %s4040_s29 = int_to_ptr.vmem [resolvable:$false] %s4039_s29 }
0x1095   : > { %v2293_v32 = vpop.permute.xlu0 %2292  ;;  %v2126_v47 = vpop.permute.xlu1 %2125 }
0x1096   : > { %3548 = vmatpush3.xpose.msk.msra.mxu0 %vm1087_vm2, %v2126_v47  ;;  %3558 = vmatpush3.xpose.msk.msra.mxu1 %vm1087_vm2, %v2293_v32 }
0x1097   : > { %3567 = vmatprep.subr.mxu1 %v4130_v1  ;;  %3552 = vmatprep.subr.mxu0 %v4130_v1 }
0x1099   : > { %v2291_v33 = vpop.permute.xlu1 %2290  ;;  %3550 = vmatmul.mubr.msk.f32.vlgmr.msra.gmra.mxu0 %vm1087_vm2, %v2123_v30  ;;  %v2461_v35 = vpop.permute.xlu0 %2460  ;;  %v3772_v30 = vld [vmem:[%s4803_s11 + $0x10] sm:$0xff]  }
0x109a   : > { %3560 = vmatmul.mubr.msk.f32.vlgmr.msra.gmra.mxu1 %vm1087_vm2, %v2291_v33  ;;  %3554 = vmatprep.mubr.msk.f32.mxu0 %vm4132_vm0, %v4130_v1 }
0x109b   : > { %3569 = vmatprep.mubr.msk.f32.mxu1 %vm4132_vm0, %v4130_v1 }
0x109d   : > { %v2463_v34 = vpop.permute.xlu1 %2462  ;;  %v2631_v37 = vpop.permute.xlu0 %2630 }
0x109e   : > { %3568 = vmatpush3.xpose.msk.msra.mxu1 %vm1087_vm2, %v2463_v34 }
0x109f   : > { %3577 = vmatprep.subr.mxu1 %v4130_v1 }
0x10a1   : > { %3570 = vmatmul.mubr.msk.f32.vlgmr.msra.gmra.mxu1 %vm1087_vm2, %v2461_v35  ;;  %v2633_v36 = vpop.permute.xlu1 %2632 }
0x10a2   : > { %3578 = vmatpush3.xpose.msk.msra.mxu1 %vm1087_vm2, %v2633_v36  ;;  %3579 = vmatprep.mubr.msk.f32.mxu1 %vm4132_vm0, %v4130_v1 }
0x10a3   : > { %3587 = vmatprep.subr.bf16.mxu1 %v4130_v1 }
0x10a5   : > { %3580 = vmatmul.mubr.msk.f32.vlgmr.msra.gmra.mxu1 %vm1087_vm2, %v2631_v37 }
0x10a6   : > { %3591 = vmatprep.mubr.msk.bf16.mxu1 %vm4132_vm0, %v4130_v1  ;;  %3588 = vmatpush3.bf16.msra.mxu1 %v3771_v29 }
0x10a7   : > { %3589 = vmatprep.subr.bf16.mxu1 %v4130_v1 }
0x10aa   : > { %3590 = vmatpush3.bf16.msra.mxu1 %v3772_v30 }
0x10ab   : > { %3603 = vmatprep.subr.bf16.mxu1 %v4130_v1 }
0x1159   : > { %v2198_v38 = vpop.f32.mrf.mxu0 }
0x115a   : > { %v2364_v39 = vpop.f32.mrf.mxu1  ;;  %v2202_v40 = vsel %vm1087_vm2, %v2198_v38, -inf }
0x115b   : > { %2203 = vmax.xlane.f32.xlu1 %v2202_v40  ;;  %v3551_v41 = vpop.f32.mrf.mxu0  ;;  %v2368_v42 = vsel %vm1087_vm2, %v2364_v39, -inf }
0x115c   : > { %2369 = vmax.xlane.f32.xlu0 %v2368_v42  ;;  %v3561_v43 = vpop.f32.mrf.mxu1 }
0x1161   : > { %v2534_v44 = vpop.f32.mrf.mxu1 }
0x1162   : > { %v2538_v45 = vsel %vm1087_vm2, %v2534_v44, -inf }
0x1163   : > { %2539 = vmax.xlane.f32.xlu0 %v2538_v45  ;;  %v3571_v46 = vpop.f32.mrf.mxu1 }
0x1165   : > { %v2704_v48 = vpop.f32.mrf.mxu1 }
0x1166   : > { %v2708_v49 = vsel %vm1087_vm2, %v2704_v48, -inf }
0x1167   : > { %v3581_v50 = vpop.f32.mrf.mxu1  ;;  %2709 = vmax.xlane.f32.xlu1 %v2708_v49 }
0x1178   : > { %2379 = vrot.lane.b32.xlu1 %v4641_v27, %s4878_s22 }
0x11e4   : > { %v2204_v51 = vpop.xlane.xlu1 %2203 }
0x11e5   : > { %v2205_v52 = vsub.f32 %v2198_v38, %v2204_v51  ;;  %v2370_v53 = vpop.xlane.xlu0 %2369 }
0x11e6   : > { %v2371_v54 = vsub.f32 %v2364_v39, %v2370_v53  ;;  %v3340_v39 = vld [vmem:[#allocation9 + $0x1] ss:$0 sm:$0xff] }
0x11e7   : > { %v2206_v55 = vmul.f32 1.442695, %v2205_v52  ;;  %v3773_v53 = vld [vmem:[#allocation14 + $0x18] sm:$0xff]  }
0x11e8   : > { %v2372_v56 = vmul.f32 1.442695, %v2371_v54  ;;  %v3774_v54 = vld [vmem:[#allocation14 + $0x10] sm:$0xff]  }
0x11e9   : > { %3805 = vpow2.f32 %v2206_v55 }
0x11ea   : > { %3807 = vpow2.f32 %v2372_v56 }
0x11ec   : > { %v2540_v3 = vpop.xlane.xlu0 %2539 }
0x11ed   : > { %v2541_v5 = vsub.f32 %v2534_v44, %v2540_v3  ;;  %v3777_v3 = vld [vmem:[%s4809_s17 + $0x28] sm:$0xff]  }
0x11ef   : > { %v2542_v6 = vmul.f32 1.442695, %v2541_v5  ;;  %v3778_v5 = vld [vmem:[%s4809_s17 + $0x20] sm:$0xff]  }
0x11f0   : > { %v2710_v57 = vpop.xlane.xlu1 %2709 }
0x11f1   : > { %v2711_v58 = vsub.f32 %v2704_v48, %v2710_v57 }
0x11f3   : > { %v2712_v59 = vmul.f32 1.442695, %v2711_v58  ;;  %v3344_v58 = vld [vmem:[#allocation11 + $0x1] ss:$0 sm:$0xff] }
0x11f4   : > { %v2380_v9 = vpop.permute.xlu1 %2379 }
0x11f5   : > { %3809 = vpow2.f32 %v2712_v59 }
0x11f6   : > { %v3806_v60 = vpop.eup %3805  ;;  %3811 = vpow2.f32 %v2542_v6  ;;  %v3346_v6 = vld [vmem:[#allocation15 + $0x1] ss:$0 sm:$0xff] }
0x11f7   : > { %v3808_v61 = vpop.eup %3807  ;;  %v2208_v62 = vsel %vm1087_vm2, %v3806_v60, 0.0 }
0x11f8   : > { %2209 = vadd.xlane.f32.xlu0 %v2208_v62  ;;  %v2374_v63 = vsel %vm1087_vm2, %v3808_v61, 0.0 }
0x11f9   : > { %2375 = vadd.xlane.f32.xlu1 %v2374_v63 }
0x1202   : > { %v3810_v0 = vpop.eup %3809 }
0x1203   : > { %v2714_v2 = vsel %vm1087_vm2, %v3810_v0, 0.0  ;;  %v3812_v7 = vpop.eup %3811 }
0x1204   : > { %2715 = vadd.xlane.f32.xlu1 %v2714_v2  ;;  %v2544_v8 = vsel %vm1087_vm2, %v3812_v7, 0.0  ;;  %v3776_v2 = vld [vmem:[%s4809_s17 + $0x30] sm:$0xff]  }
0x120e   : > { %2213 = vrot.lane.b32.xlu0 %v4641_v27, %s4879_s2  ;;  %s3368_s2 = sshll.u32 %s4279_s3, 7  ;;  %s4041_s3 = scalar_lea.vmem %s4040_s29, 256 }
0x120f   : > { %s3108_s28 = scalar_lea.hbm %s4885_s24, %s3368_s2 }
0x1215   : > { %2549 = vrot.lane.b32.xlu1 %v4641_v27, %s4880_s27 }
0x122d   : > { %2545 = vadd.xlane.f32.xlu0 %v2544_v8 }
0x1243   : > { %2719 = vrot.lane.b32.xlu0 %v4641_v27, %s4881_s1 }
0x1281   : > { %v2210_v10 = vpop.xlane.xlu0 %2209 }
0x1282   : > { %3813 = vrcp.f32 %v2210_v10  ;;  %v2376_v11 = vpop.xlane.xlu1 %2375 }
0x1283   : > { %3815 = vrcp.f32 %v2376_v11 }
0x1285   : > { %v2214_v12 = vpop.permute.xlu0 %2213 }
0x1286   : > { %3553 = vmatpush3.msra.mxu0 %v2214_v12 }
0x1287   : > { %3562 = vmatprep.subr.mxu0 %v4130_v1 }
0x128d   : > { %v2716_v14 = vpop.xlane.xlu1 %2715 }
0x128f   : > { %v3814_v13 = vpop.eup %3813 }
0x1290   : > { %v2212_v15 = vmul.f32 %v3814_v13, %v3806_v60  ;;  %v3816_v16 = vpop.eup %3815  ;;  %v3345_v60 = vld [vmem:[#allocation12 + $0x1] ss:$0 sm:$0xff] }
0x1291   : > { %v2378_v17 = vmul.f32 %v3816_v16, %v3808_v61  ;;  %v2550_v18 = vpop.permute.xlu1 %2549 }
0x1292   : > { %3555 = vmatmul.mubr.msk.f32.vlgmr.msra.gmra.mxu0 %vm1087_vm2, %v2212_v15 }
0x1293   : > { %3563 = vmatpush3.msra.mxu0 %v2380_v9  ;;  %3564 = vmatprep.mubr.msk.f32.mxu0 %vm4132_vm0, %v4130_v1 }
0x1294   : > { %3572 = vmatprep.subr.mxu0 %v4130_v1 }
0x1296   : > { %3565 = vmatmul.mubr.msk.f32.vlgmr.msra.gmra.mxu0 %vm1087_vm2, %v2378_v17 }
0x1297   : > { %3573 = vmatpush3.msra.mxu0 %v2550_v18  ;;  %3574 = vmatprep.mubr.msk.f32.mxu0 %vm4132_vm0, %v4130_v1 }
0x1298   : > { %3582 = vmatprep.subr.mxu0 %v4130_v1 }
0x12b6   : > { %v2546_v19 = vpop.xlane.xlu0 %2545 }
0x12b7   : > { %3817 = vrcp.f32 %v2546_v19 }
0x12b8   : > { %3819 = vrcp.f32 %v2716_v14 }
0x12ba   : > { %v2720_v23 = vpop.permute.xlu0 %2719 }
0x12c4   : > { %v3818_v20 = vpop.eup %3817 }
0x12c5   : > { %v2548_v21 = vmul.f32 %v3818_v20, %v3812_v7  ;;  %v3820_v22 = vpop.eup %3819 }
0x12c6   : > { %v2718_v24 = vmul.f32 %v3820_v22, %v3810_v0  ;;  %v3775_v0 = vld [vmem:[%s4809_s17 + $0x38] sm:$0xff]  }
0x12c7   : > { %3575 = vmatmul.mubr.msk.f32.vlgmr.msra.gmra.mxu0 %vm1087_vm2, %v2548_v21 }
0x12c8   : > { %3583 = vmatpush3.msra.mxu0 %v2720_v23  ;;  %3584 = vmatprep.mubr.msk.f32.mxu0 %vm4132_vm0, %v4130_v1 }
0x12c9   : > { %3595 = vmatprep.subr.bf16.mxu0 %v4130_v1 }
0x12cb   : > { %3585 = vmatmul.mubr.msk.f32.vlgmr.msra.gmra.mxu0 %vm1087_vm2, %v2718_v24 }
0x12cc   : > { %3599 = vmatprep.mubr.msk.bf16.mxu0 %vm4132_vm0, %v4130_v1  ;;  %3596 = vmatpush3.bf16.msra.mxu0 %v3773_v53 }
0x12cd   : > { %3597 = vmatprep.subr.bf16.mxu0 %v4130_v1 }
0x12d0   : > { %3598 = vmatpush3.bf16.msra.mxu0 %v3774_v54 }
0x1352   : > { %v2285_v25 = vpop.f32.mrf.mxu0 }
0x1353   : > { %2289 = vst.msk [vmem:[#allocation2] sm:$0xff] %vm1087_vm2, %v2285_v25 }
0x1354   : > { %v3556_v26 = vpop.f32.mrf.mxu0 }
0x1356   : > { %v2451_v27 = vpop.f32.mrf.mxu0 }
0x1357   : > { %2456 = vrot.lane.b32.xlu1 %v2451_v27, %s4882_s21 }
0x1358   : > { %v3566_v28 = vpop.f32.mrf.mxu0 }
0x1387   : > { %v2621_v31 = vpop.f32.mrf.mxu0 }
0x1388   : > { %2626 = vrot.lane.b32.xlu0 %v2621_v31, %s4883_s12  ;;  %s3268_s12 = sshll.u32 %s756_s26, 3 }
0x1389   : > { %v3576_v32 = vpop.f32.mrf.mxu0  ;;  %s758_s27 = scalar_lea.vmem [#allocation17], %s3268_s12 }
0x138a   : > { %s3110_s1 = sshll.u32 %s758_s27, 4  ;;  %s3111_s1 = int_to_ptr.vmem [resolvable:$true] %s3110_s1 }
0x138b   : > { %v2791_v47 = vpop.f32.mrf.mxu0  ;;  %p4042_p9 = scmp.lt.s32.totalorder %s3111_s1, %s4040_s29 }
0x138c   : > { %2796 = vrot.lane.b32.xlu1 %v2791_v47, %s4884_s30  ;;  %s4035_s30 = scalar_lea.vmem %s3111_s1, 128 }
0x138d   : > { %v3586_v33 = vpop.f32.mrf.mxu0  ;;  %p4036_p3 = scmp.ne.s32.totalorder %s3111_s1, %s4035_s30  ;;  %p4043_p7 = scmp.lt.s32.totalorder %s4041_s3, %s4035_s30 }
0x138f   : > { %p4037_p4 = pnand %p4036_p3, %p4886_p2  ;;  %p4044_p8 = por %p4043_p7, %p4042_p9 }
0x1391   : > { %p4038_p13 = pneg %p4037_p4 }
0x1393   : > { %p4045_p11 = pnand %p4044_p8, %p4038_p13 }
0x13c9   : > { %v2457_v34 = vpop.permute.xlu1 %2456 }
0x13ca   : > { %2459 = vst.msk [vmem:[#allocation2] sm:$0xff] %vm1420_vm3, %v2457_v34 }
0x13fa   : > { %v2627_v35 = vpop.permute.xlu0 %2626 }
0x13fb   : > { %2629 = vst.msk [vmem:[#allocation2] sm:$0xff] %vm1591_vm4, %v2627_v35 }
0x13fe   : > { %v2797_v36 = vpop.permute.xlu1 %2796 }
0x13ff   : > { %2799 = vst.msk [vmem:[#allocation2] sm:$0xff] %vm1762_vm5, %v2797_v36 }
0x1406   : > { %v2800_v37 = vld [vmem:[#allocation2] sm:$0xff] }
0x1407   : > { %v2801_v38 = vpack.c.bf16 %v2800_v37, %v2800_v37  ;;  %v3365_v37 = vld [vmem:[%s4811_s19] ss:$0 sm:$0xff] }
0x1409   : > { %3592 = vmatmul.mubr.msk.bf16.vlgmr.msra.gmra.mxu1 %vm800_vm1, %v2801_v38 }
0x140a   : > { %3611 = vmatprep.mubr.msk.bf16.mxu1 %vm4132_vm0, %v4130_v1  ;;  %3604 = vmatpush3.bf16.msra.mxu1 %v3775_v0 }
0x140b   : > { %3605 = vmatprep.subr.bf16.mxu1 %v4130_v1 }
0x140e   : > { %3606 = vmatpush3.bf16.msra.mxu1 %v3776_v2 }
0x140f   : > { %3607 = vmatprep.subr.bf16.mxu1 %v4130_v1 }
0x1412   : > { %3608 = vmatpush3.bf16.msra.mxu1 %v3777_v3 }
0x1413   : > { %3609 = vmatprep.subr.bf16.mxu1 %v4130_v1  ;;  %v3359_v1 = vld [vmem:[%s4810_s18 + $0x1] ss:$0 sm:$0xff] }
0x1416   : > { %3610 = vmatpush3.bf16.msra.mxu1 %v3778_v5 }
0x14c9   : > { %v2864_v40 = vpop.f32.mrf.mxu1 }
0x14ca   : > { %v2865_v41 = vadd.f32 %v3340_v39, %v2864_v40  ;;  %v3366_v39 = vld [vmem:[%s4812_s20] ss:$0 sm:$0xff] }
0x14cb   : > { %v3593_v42 = vpop.f32.mrf.mxu1 }
0x14cc   : > { %v2870_v43 = vadd.f32 %v2865_v41, %v4615_v4 }
0x14cd   : > { %v2867_v44 = vpop.f32.mrf.mxu1 }
0x14ce   : > { %v2875_v45 = vsel %vm800_vm1, %v2870_v43, 0.0 }
0x14cf   : > { %2876 = vadd.xlane.f32.xlu0 %v2875_v45  ;;  %v3594_v46 = vpop.f32.mrf.mxu1 }
0x1558   : > { %v2877_v48 = vpop.xlane.xlu0 %2876 }
0x1559   : > { %v2878_v49 = vmul.f32 0.03125, %v2877_v48 }
0x155b   : > { %v2879_v50 = vsub.f32 %v2870_v43, %v2878_v49 }
0x155d   : > { %v2880_v51 = vmul.f32 %v2879_v50, %v2879_v50 }
0x155f   : > { %v2881_v52 = vsel %vm800_vm1, %v2880_v51, 0.0 }
0x1560   : > { %2882 = vadd.xlane.f32.xlu1 %v2881_v52 }
0x15e9   : > { %v2883_v55 = vpop.xlane.xlu1 %2882 }
0x15ea   : > { %v2884_v4 = vmul.f32 0.03125, %v2883_v55 }
0x15ec   : > { %v2885_v56 = vadd.f32 1e-05, %v2884_v4 }
0x15ee   : > { %3821 = vrsqrt.f32 %v2885_v56 }
0x15fb   : > { %v3822_v57 = vpop.eup %3821 }
0x15fc   : > { %v2887_v59 = vmul.f32 %v3822_v57, %v2879_v50 }
0x15fe   : > { %v2894_v61 = vmul.f32 %v3344_v58, %v2887_v59 }
0x1600   : > { %v2901_v62 = vadd.f32 %v3345_v60, %v2894_v61 }
0x1602   : > { %v2902_v63 = vpack.c.bf16 %v2901_v62, %v2901_v62 }
0x1604   : > { %3600 = vmatmul.mubr.msk.bf16.vlgmr.msra.gmra.mxu0 %vm800_vm1, %v2902_v63 }
0x16c4   : > { %v2965_v7 = vpop.f32.mrf.mxu0 }
0x16c5   : > { %v2966_v8 = vadd.f32 %v3346_v6, %v2965_v7 }
0x16c6   : > { %v3601_v9 = vpop.f32.mrf.mxu0 }
0x16c7   : > { %v2972_v10 = vmul.f32 0.044715, %v2966_v8  ;;  %v2971_v18 = vmul.f32 0.5, %v2966_v8 }
0x16c8   : > { %v2968_v11 = vpop.f32.mrf.mxu0 }
0x16c9   : > { %v2973_v12 = vmul.f32 %v2972_v10, %v2966_v8 }
0x16ca   : > { %v3602_v13 = vpop.f32.mrf.mxu0 }
0x16cb   : > { %v2974_v14 = vmul.f32 %v2973_v12, %v2966_v8 }
0x16cd   : > { %v2975_v15 = vadd.f32 %v2974_v14, %v2966_v8 }
0x16cf   : > { %v2976_v16 = vmul.f32 0.7978846, %v2975_v15 }
0x16d1   : > { %3823 = vtanh.f32 %v2976_v16 }
0x16de   : > { %v3824_v17 = vpop.eup %3823 }
0x16df   : > { %v2978_v19 = vadd.f32 1.0, %v3824_v17 }
0x16e1   : > { %v2979_v20 = vmul.f32 %v2978_v19, %v2971_v18 }
0x16e3   : > { %v2980_v21 = vpack.c.bf16 %v2979_v20, %v2979_v20 }
0x16e5   : > { %3612 = vmatmul.mubr.msk.bf16.vlgmr.msra.gmra.mxu1 %vm1978_vm6, %v2980_v21 }
0x17a5   : > { %v3059_v22 = vpop.f32.mrf.mxu1 }
0x17a6   : > { %v3060_v23 = vadd.f32 %v3359_v1, %v3059_v22 }
0x17a7   : > { %v3613_v24 = vpop.f32.mrf.mxu1 }
0x17a8   : > { %v3065_v25 = vadd.f32 %v3060_v23, %v2870_v43 }
0x17a9   : > { %v3062_v26 = vpop.f32.mrf.mxu1 }
0x17aa   : > { %v3068_v27 = vsel %vm800_vm1, %v3065_v25, 0.0 }
0x17ab   : > { %3069 = vadd.xlane.f32.xlu0 %v3068_v27  ;;  %v3614_v28 = vpop.f32.mrf.mxu1 }
0x1834   : > { %v3070_v29 = vpop.xlane.xlu0 %3069 }
0x1835   : > { %v3071_v30 = vmul.f32 0.03125, %v3070_v29 }
0x1837   : > { %v3072_v31 = vsub.f32 %v3065_v25, %v3071_v30 }
0x1839   : > { %v3073_v32 = vmul.f32 %v3072_v31, %v3072_v31 }
0x183b   : > { %v3074_v47 = vsel %vm800_vm1, %v3073_v32, 0.0 }
0x183c   : > { %3075 = vadd.xlane.f32.xlu0 %v3074_v47 }
0x18c5   : > { %v3076_v33 = vpop.xlane.xlu0 %3075 }
0x18c6   : > { %v3077_v34 = vmul.f32 0.03125, %v3076_v33 }
0x18c8   : > { %v3078_v35 = vadd.f32 1e-05, %v3077_v34 }
0x18ca   : > { %3825 = vrsqrt.f32 %v3078_v35 }
0x18d7   : > { %v3826_v36 = vpop.eup %3825 }
0x18d8   : > { %v3080_v38 = vmul.f32 %v3826_v36, %v3072_v31 }
0x18da   : > { %v3087_v40 = vmul.f32 %v3365_v37, %v3080_v38 }
0x18dc   : > { %v3094_v41 = vadd.f32 %v3366_v39, %v3087_v40 }
0x18de   : > { %3095 = vst.msk [vmem:[%s758_s27] sm:$0xff] %vm800_vm1, %v3094_v41 }
0x18df   : > { %4048 = shalt.err (!%p4045_p11)
}
0x18e0   : > { %s4049_s12 = scalar_lea.hbm %s3108_s28, 128  ;;  %s4053_s2 = scalar_lea.hbm %s4885_s24, 256 }
0x18e1   : > { %p4050_p12 = scmp.ne.s32.totalorder %s3108_s28, %s4049_s12  ;;  %p4054_p5 = scmp.lt.s32.totalorder %s3108_s28, %s4885_s24 }
0x18e2   : > { %p4055_p0 = scmp.lt.s32.totalorder %s4053_s2, %s4049_s12 }
0x18e3   : > { %p4051_p10 = pnand %p4050_p12, %p4886_p2 }
0x18e4   : > { %p4056_p1 = por %p4055_p0, %p4054_p5 }
0x18e5   : > { %p4052_p6 = pneg %p4051_p10 }
0x18e7   : > { %p4057_p3 = pnand %p4056_p1, %p4052_p6 }
0x18e9   : > { %4060 = shalt.err (!%p4057_p3)
}
0x18ea   : > { %3647 = dma.vmem_to_hbm [thread:$0]  (%p4886_p2), %s3111_s1, 128, %s3108_s28, %s3097_s4  }
0x18eb PF: > { %s4887_s23 = sld [smem:[#allocation26_spill]] }
0x18ec   : > { %s4888_s30 = sld [smem:[#allocation24_spill]] }
0x18ed   : > { %s4889_s0 = sld [smem:[#allocation29_spill]] }
0x18f1   : > { %p3694_p4 = scmp.ge.s32.totalorder %s4887_s23, 2 }
0x18f2   : > { %s3122_s29 = sand.u32 1, %s4888_s30  }
0x18f3   : > { %p4890_p13 = scmp.ne.s32.totalorder %s4889_s0, 0  ;;  %s3123_s3 = scalar_lea.sflag [#allocation5], %s3122_s29 }
0x18f5   : > { %p3675_p9 = pnand %p3694_p4, %p4890_p13 }
0x18f7   : > { %p3676_p7 = pneg %p3675_p9 }
0x18f9   : > { %4098 = dma.done.wait (%p3676_p7), %s3123_s3, 128  }
0x18fa   : > { %4100 = vsyncadd (%p3676_p7), %s3123_s3, 4294967168  ;;  %s4891_s27 = sld [smem:[#allocation27_spill]]  ;;  %s4894_s2 = smov %s4107_s25 }
0x18fb   : > { %s4892_s12 = sld [smem:[#allocation25_spill]] }
0x18fc   : > { %s4893_s26 = sld [smem:[#allocation28_spill]] }
0x1900   : > { %p36_p8 = scmp.ge.s32.totalorder %s4891_s27, 4  }
0x1901   : > { %s4895_s25 = smov %s4892_s12 }
0x1902   :  { %38 = sbr.rel (!%p36_p8) target bundleno = 17 (0x11), region = 184 }
0x1907   :  { %3128 = vsyncpa [#allocation4], 1 }
0x1908   :  { %3130 = vsyncpa [#allocation4 + $0x1], 1 }
0x1909   :  { %3131 = vsyncpa [#allocation7], 1 }
0x190a   :  { %3132 = vsyncpa [#allocation10], 1 }
0x190b   :  { %3133 = vsyncpa [#allocation13], 1 }
0x190c   :  { %3134 = vsyncpa [#allocation16], 1 }
0x190d   :  { %3135 = vsyncpa [#allocation5], 1 }
0x190e   :  { %3137 = vsyncpa [#allocation5 + $0x1], 1 }

</bundles_post_ra>
